<compile_context>
chip_gen: v5e
topology: v5e:2x2
jax: 0.10.0
libtpu: 0.0.40
codegen_flags: <defaults>
</compile_context>

<pallas_src>
import functools

import jax
import jax.numpy as jnp
import numpy as np
from jax.experimental import pallas as pl
from jax.experimental.pallas import tpu as pltpu


def _round_up(n, m):
    return ((n + m - 1) // m) * m


def _nbytes(*arrs):
    return int(sum(int(np.prod(a.shape)) * jnp.dtype(a.dtype).itemsize
                   for a in arrs))


@functools.lru_cache(maxsize=1)
def _vmem_limit_bytes():
    # ~100 MiB on 128 MiB chips (v5e/v6e), ~48 MiB on v7x (64 MiB per TC).
    try:
        cap = int(pltpu.get_tpu_info().vmem_capacity_bytes)
    except Exception:  # pragma: no cover - conservative fallback
        cap = 128 * 1024 * 1024
    return int(min(cap * 3 // 4, 100 * 1024 * 1024))


# ---------------------------------------------------------------------------
# Stage-1 input 1x1 conv: tiled matmul with Cin streamed in chunks
# ---------------------------------------------------------------------------

def _in_conv_kernel(x_ref, w_ref, b_ref, o_ref, acc_ref):
    k = pl.program_id(2)

    @pl.when(k == 0)
    def _():
        acc_ref[...] = jnp.zeros_like(acc_ref)

    acc_ref[...] += jnp.dot(w_ref[...], x_ref[0],
                            preferred_element_type=jnp.float32)

    @pl.when(k == pl.num_programs(2) - 1)
    def _():
        o_ref[0] = acc_ref[...] + b_ref[...]


def in_conv1x1(x, w, b, *, t_tile, kc):
    """x: (B, Cin_p, Tp) compute-dtype, w: (F, Cin_p), b: (F, 1) f32.

    Returns the (B, F, Tp) f32 activation of the stage-1 input conv.  Cin is
    streamed in `kc` chunks with an f32 VMEM accumulator so the big input
    never has to sit in VMEM as a single block.
    """
    B, Cin_p, Tp = x.shape
    F_ = w.shape[0]
    nt = Tp // t_tile
    nk = Cin_p // kc

    flops = 2 * B * Cin_p * F_ * Tp
    bytes_acc = _nbytes(x, w, b) + B * F_ * Tp * 4

    return pl.pallas_call(
        _in_conv_kernel,
        out_shape=jax.ShapeDtypeStruct((B, F_, Tp), jnp.float32),
        grid=(B, nt, nk),
        in_specs=[
            pl.BlockSpec((1, kc, t_tile), lambda b, tt, kk: (b, kk, tt)),
            pl.BlockSpec((F_, kc), lambda b, tt, kk: (0, kk)),
            pl.BlockSpec((F_, 1), lambda b, tt, kk: (0, 0)),
        ],
        out_specs=pl.BlockSpec((1, F_, t_tile), lambda b, tt, kk: (b, 0, tt)),
        scratch_shapes=[pltpu.VMEM((F_, t_tile), jnp.float32)],
        compiler_params=pltpu.CompilerParams(
            dimension_semantics=("parallel", "parallel", "arbitrary"),
            vmem_limit_bytes=_vmem_limit_bytes()),
        cost_estimate=pl.CostEstimate(flops=int(flops), transcendentals=0,
                                      bytes_accessed=int(bytes_acc)),
    )(x, w, b)


# ---------------------------------------------------------------------------
# Fused residual stack (one pallas_call per stage)
# ---------------------------------------------------------------------------

def _stack_kernel(*refs, dilations, t_valid, c_valid, fuse_softmax_in_conv,
                  compute_dtype):
    """SingleStageModel minus the (possibly huge) stage-1 input conv.

    Stage 1     : refs = (act, m, wd, bd, w1, b1, out_w, out_b, out)
    Stage >= 2  : refs = (prev_out, m, in_w, in_b, wd, bd, w1, b1,
                          out_w, out_b, out)   (softmax*mask + in-conv fused)
    wd is (L, 3F, F): the three Conv1d(kernel=3) taps stacked along the
    OUTPUT rows [W_prev; W_mid; W_next].
    """
    f32 = jnp.float32
    if fuse_softmax_in_conv:
        (x_ref, m_ref, in_w_ref, in_b_ref, wd_ref, bd_ref,
         w1_ref, b1_ref, out_w_ref, out_b_ref, o_ref) = refs
    else:
        (x_ref, m_ref, wd_ref, bd_ref,
         w1_ref, b1_ref, out_w_ref, out_b_ref, o_ref) = refs

    x = x_ref[0]                                          # (Cin, Tp) / (F, Tp)
    m = m_ref[0].astype(f32)                              # (1, Tp)
    Tp = x.shape[-1]
    F_ = w1_ref.shape[-1]
    t_idx = jax.lax.broadcasted_iota(jnp.int32, (1, Tp), 1)

    if fuse_softmax_in_conv:
        # Inter-stage softmax over channels (excluding layout-pad channels),
        # * mask[:, 0:1, :], then this stage's input 1x1 conv (Cin is small).
        C = x.shape[0]
        xf = x.astype(f32)
        if c_valid < C:
            c_idx = jax.lax.broadcasted_iota(jnp.int32, (C, 1), 0)
            valid_c = c_idx < c_valid
            mx = jnp.max(jnp.where(valid_c, xf, jnp.finfo(f32).min),
                         axis=0, keepdims=True)
            e = jnp.where(valid_c, jnp.exp(xf - mx), 0.0)
        else:
            mx = jnp.max(xf, axis=0, keepdims=True)
            e = jnp.exp(xf - mx)
        s = jnp.sum(e, axis=0, keepdims=True)              # (1, Tp)
        sm = e * pl.reciprocal(s, approx=False) * m
        act = (jnp.dot(in_w_ref[...], sm.astype(compute_dtype),
                       preferred_element_type=f32) + in_b_ref[...])
    else:
        act = x.astype(f32)

    # Keep the artificial T padding exactly zero so the roll-based taps see
    # the same zero padding PyTorch's Conv1d would.
    if t_valid < Tp:
        act = jnp.where(t_idx < t_valid, act, 0.0)

    for l, d in enumerate(dilations):
        # One MXU matmul with 3F output rows: [W_prev; W_mid; W_next] @ act.
        y = jnp.dot(wd_ref[l], act.astype(compute_dtype),
                    preferred_element_type=f32)             # (3F, Tp)
        # roll commutes with the 1x1-in-time matmul, so shift the outputs.
        y_prev = pltpu.roll(y[:F_], shift=d % Tp, axis=1)
        y_next = pltpu.roll(y[2 * F_:], shift=(-d) % Tp, axis=1)
        h = (jnp.where(t_idx >= d, y_prev, 0.0)
             + y[F_:2 * F_]
             + jnp.where(t_idx < Tp - d, y_next, 0.0)
             + bd_ref[l])
        h = jnp.maximum(h, 0.0)                             # ReLU
        out = (jnp.dot(w1_ref[l], h.astype(compute_dtype),
                       preferred_element_type=f32) + b1_ref[l])
        # Dropout is identity in eval mode.
        act = (act + out) * m

    o_ref[0] = ((jnp.dot(out_w_ref[...], act.astype(compute_dtype),
                         preferred_element_type=f32)
                 + out_b_ref[...]) * m).astype(o_ref.dtype)


def dilated_stack(x, m1, wts, *, dilations, t_valid, c_valid,
                  fuse_softmax_in_conv, compute_dtype):
    """x: (B, Cin, Tp), m1: (B, 1, Tp).  Returns (B, Cp, Tp) f32."""
    B, Cin, Tp = x.shape
    F_ = wts["w1"].shape[-1]
    Cp = wts["out_w"].shape[0]
    L = wts["wd"].shape[0]

    kernel = functools.partial(
        _stack_kernel, dilations=tuple(dilations), t_valid=t_valid,
        c_valid=c_valid, fuse_softmax_in_conv=fuse_softmax_in_conv,
        compute_dtype=compute_dtype)

    inputs = [x, m1]
    in_specs = [
        pl.BlockSpec((1, Cin, Tp), lambda b: (b, 0, 0)),
        pl.BlockSpec((1, 1, Tp), lambda b: (b, 0, 0)),
    ]
    if fuse_softmax_in_conv:
        inputs += [wts["in_w"], wts["in_b"]]
        in_specs += [
            pl.BlockSpec((F_, Cin), lambda b: (0, 0)),
            pl.BlockSpec((F_, 1), lambda b: (0, 0)),
        ]
    inputs += [wts["wd"], wts["bd"], wts["w1"], wts["b1"],
               wts["out_w"], wts["out_b"]]
    in_specs += [
        pl.BlockSpec((L, 3 * F_, F_), lambda b: (0, 0, 0)),
        pl.BlockSpec((L, F_, 1), lambda b: (0, 0, 0)),
        pl.BlockSpec((L, F_, F_), lambda b: (0, 0, 0)),
        pl.BlockSpec((L, F_, 1), lambda b: (0, 0, 0)),
        pl.BlockSpec((Cp, F_), lambda b: (0, 0)),
        pl.BlockSpec((Cp, 1), lambda b: (0, 0)),
    ]

    flops = 2 * B * Tp * (L * (3 * F_ * F_ + F_ * F_) + Cp * F_
                          + (Cin * F_ if fuse_softmax_in_conv else 0))
    transc = B * Cin * Tp if fuse_softmax_in_conv else 0
    bytes_acc = _nbytes(*inputs) + B * Cp * Tp * 4

    return pl.pallas_call(
        kernel,
        out_shape=jax.ShapeDtypeStruct((B, Cp, Tp), jnp.float32),
        grid=(B,),
        in_specs=in_specs,
        out_specs=pl.BlockSpec((1, Cp, Tp), lambda b: (b, 0, 0)),
        compiler_params=pltpu.CompilerParams(
            dimension_semantics=("parallel",),
            vmem_limit_bytes=_vmem_limit_bytes()),
        cost_estimate=pl.CostEstimate(flops=int(flops),
                                      transcendentals=int(transc),
                                      bytes_accessed=int(bytes_acc)),
    )(*inputs)


# ---------------------------------------------------------------------------
# Model assembly (glue in plain JAX; compute lives in the Pallas kernels)
# ---------------------------------------------------------------------------

def init_params(key, num_stages, num_layers, num_f_maps, dim, num_classes):
    def dense(k, cout, cin, scale=0.1):
        kw, kb = jax.random.split(k)
        return (scale * jax.random.normal(kw, (cout, cin), jnp.float32),
                scale * jax.random.normal(kb, (cout, 1), jnp.float32))

    def stage(k, in_dim):
        k_in, k_layers, k_out = jax.random.split(k, 3)
        p = {}
        p["in_w"], p["in_b"] = dense(k_in, num_f_maps, in_dim)
        lk = jax.random.split(k_layers, num_layers)
        wd, bd, w1, b1 = [], [], [], []
        for i in range(num_layers):
            k1, k2, k3 = jax.random.split(lk[i], 3)
            # Conv1d(kernel=3) taps stacked along OUTPUT rows:
            # [W_prev; W_mid; W_next] -> (3F, F)
            wd.append(0.1 * jax.random.normal(
                k1, (3 * num_f_maps, num_f_maps), jnp.float32))
            bd.append(0.1 * jax.random.normal(k2, (num_f_maps, 1),
                                              jnp.float32))
            w, b = dense(k3, num_f_maps, num_f_maps)
            w1.append(w)
            b1.append(b)
        p["wd"] = jnp.stack(wd)      # (L, 3F, F)
        p["bd"] = jnp.stack(bd)      # (L, F, 1)
        p["w1"] = jnp.stack(w1)      # (L, F, F)
        p["b1"] = jnp.stack(b1)      # (L, F, 1)
        p["out_w"], p["out_b"] = dense(k_out, num_classes, num_f_maps)
        return p

    keys = jax.random.split(key, num_stages)
    params = [stage(keys[0], dim)]                 # stage1: dim -> classes
    for s in range(1, num_stages):                 # later: classes -> classes
        params.append(stage(keys[s], num_classes))
    return params


def _prep_stage(p, *, cin_pad, c_pad, cdt):
    """Pad weights for layout (Cin chunking / C sublane padding), cast matmul
    operands to compute dtype; biases stay f32."""
    C = p["out_w"].shape[0]
    cin = p["in_w"].shape[1]
    return {
        "in_w": jnp.pad(p["in_w"], ((0, 0), (0, cin_pad - cin))).astype(cdt),
        "in_b": p["in_b"],
        "wd": p["wd"].astype(cdt),
        "bd": p["bd"],
        "w1": p["w1"].astype(cdt),
        "b1": p["b1"],
        "out_w": jnp.pad(p["out_w"], ((0, c_pad - C), (0, 0))).astype(cdt),
        "out_b": jnp.pad(p["out_b"], ((0, c_pad - C), (0, 0))),
    }


def multi_stage(params, x, mask, *, compute_dtype=jnp.float32):
    """x: (B, dim, T), mask: (B, num_classes, T).  Returns (S, B, classes, T)."""
    B, Cin, T = x.shape
    C = params[0]["out_w"].shape[0]

    # Lane-dense T padding, also divisible by the in-conv T tile.
    t_tile = min(1024, _round_up(T, 128))
    Tp = _round_up(T, t_tile)
    # Sublane-dense class padding.
    Cp = _round_up(C, 8)
    # Cin chunking for the stage-1 input conv.
    if Cin <= 1024:
        kc, Cin_p = Cin, Cin
    else:
        kc = 512
        Cin_p = _round_up(Cin, kc)

    cdt = compute_dtype
    xp = jnp.pad(x, ((0, 0), (0, Cin_p - Cin), (0, Tp - T))).astype(cdt)
    m1 = jnp.pad(mask[:, 0:1, :], ((0, 0), (0, 0), (0, Tp - T)))  # (B,1,Tp)

    # --- stage 1: streamed/tiled input conv, then the fused residual stack.
    p0 = _prep_stage(params[0], cin_pad=Cin_p, c_pad=Cp, cdt=cdt)
    dil0 = tuple(2 ** i for i in range(params[0]["wd"].shape[0]))
    act0 = in_conv1x1(xp, p0["in_w"], p0["in_b"], t_tile=t_tile, kc=kc)
    out = dilated_stack(act0, m1, p0, dilations=dil0, t_valid=T, c_valid=C,
                        fuse_softmax_in_conv=False, compute_dtype=cdt)
    outs = [out]

    # --- stages >= 2: softmax*mask + in-conv + residual stack fully fused.
    for p_raw in params[1:]:
        p = _prep_stage(p_raw, cin_pad=Cp, c_pad=Cp, cdt=cdt)
        dil = tuple(2 ** i for i in range(p_raw["wd"].shape[0]))
        out = dilated_stack(out, m1, p, dilations=dil, t_valid=T, c_valid=C,
                            fuse_softmax_in_conv=True, compute_dtype=cdt)
        outs.append(out)

    return jnp.stack(outs, axis=0)[:, :, :C, :T]   # (S, B, classes, T)


# ---------------------------------------------------------------------------
# Pure-JAX reference (same math, zero-pad shift construction) for sanity check
# ---------------------------------------------------------------------------

def _ref_conv1x1(x, w, b):
    return jnp.einsum("oc,bct->bot", w, x) + b[None]


def _ref_stage(p, x, mask, apply_softmax):
    m = mask[:, 0:1, :]
    if apply_softmax:
        x = jax.nn.softmax(x, axis=1) * m
    out = _ref_conv1x1(x, p["in_w"], p["in_b"])
    L = p["wd"].shape[0]
    F_ = p["w1"].shape[-1]
    for l in range(L):
        d = 2 ** l
        B, _, T = out.shape
        zp = jnp.zeros((B, F_, d), out.dtype)
        if d < T:
            x_prev = jnp.concatenate([zp, out[:, :, : T - d]], axis=2)
            x_next = jnp.concatenate([out[:, :, d:], zp], axis=2)
        else:
            x_prev = jnp.zeros_like(out)
            x_next = jnp.zeros_like(out)
        W0 = p["wd"][l, :F_, :]
        W1 = p["wd"][l, F_:2 * F_, :]
        W2 = p["wd"][l, 2 * F_:, :]
        h = (jnp.einsum("oc,bct->bot", W0, x_prev)
             + jnp.einsum("oc,bct->bot", W1, out)
             + jnp.einsum("oc,bct->bot", W2, x_next) + p["bd"][l][None])
        h = jnp.maximum(h, 0.0)
        o2 = jnp.einsum("oc,bct->bot", p["w1"][l], h) + p["b1"][l][None]
        out = (out + o2) * m
    return _ref_conv1x1(out, p["out_w"], p["out_b"]) * m


def _ref_multi_stage(params, x, mask):
    out = _ref_stage(params[0], x, mask, apply_softmax=False)
    outs = [out]
    for p in params[1:]:
        out = _ref_stage(p, out, mask, apply_softmax=True)
        outs.append(out)
    return jnp.stack(outs, axis=0)


# ---------------------------------------------------------------------------

if __name__ == "__main__":
    num_stages, num_layers = 2, 3
    num_f_maps, dim, num_classes = 32, 4, 10   # C=10 exercises the sublane pad
    B, T = 2, 100                              # T=100 exercises the lane pad

    key = jax.random.PRNGKey(0)
    k_params, k_x = jax.random.split(key)
    params = init_params(k_params, num_stages, num_layers, num_f_maps, dim,
                         num_classes)

    x = jax.random.normal(k_x, (B, dim, T), jnp.float32)
    # mask: (B, num_classes, T), second batch element padded after T//2
    mask = np.ones((B, num_classes, T), np.float32)
    mask[1, :, T // 2:] = 0.0
    mask = jnp.asarray(mask)

    ref = jax.block_until_ready(_ref_multi_stage(params, x, mask))

    # f32 path: tight check against the pure-JAX reference.
    run_f32 = jax.jit(lambda p, xx, mm: multi_stage(
        p, xx, mm, compute_dtype=jnp.float32))
    out_f32 = jax.block_until_ready(run_f32(params, x, mask))
    assert out_f32.shape == (num_stages, B, num_classes, T), out_f32.shape
    np.testing.assert_allclose(np.asarray(out_f32), np.asarray(ref),
                               rtol=1e-4, atol=1e-4)

    # bf16 storage / MXU operands with f32 accumulation (perf config).
    run_bf16 = jax.jit(lambda p, xx, mm: multi_stage(
        p, xx, mm, compute_dtype=jnp.bfloat16))
    out_bf16 = jax.block_until_ready(run_bf16(params, x, mask))
    assert out_bf16.shape == (num_stages, B, num_classes, T), out_bf16.shape
    np.testing.assert_allclose(np.asarray(out_bf16), np.asarray(ref),
                               rtol=1e-1, atol=1e-1)

    print("KERNEL_OK")
</pallas_src>

<mosaic_0001>
module attributes {stable_mosaic.version = 11 : i64} {
  func.func @_stack_kernel(%arg0: i32, %arg1: memref<1x32x128xf32, #tpu.memory_space<vmem>>, %arg2: memref<1x1x128xf32, #tpu.memory_space<vmem>>, %arg3: memref<3x96x32xf32, #tpu.memory_space<vmem>>, %arg4: memref<3x32x1xf32, #tpu.memory_space<vmem>>, %arg5: memref<3x32x32xf32, #tpu.memory_space<vmem>>, %arg6: memref<3x32x1xf32, #tpu.memory_space<vmem>>, %arg7: memref<16x32xf32, #tpu.memory_space<vmem>>, %arg8: memref<16x1xf32, #tpu.memory_space<vmem>>, %arg9: memref<1x16x128xf32, #tpu.memory_space<vmem>>) attributes {dimension_semantics = [#tpu.dimension_semantics<parallel>], iteration_bounds = array<i64: 2>, scalar_prefetch = 0 : i64, scratch_operands = 0 : i64, tpu.core_type = #tpu.core_type<tc>, window_params = [{transform_indices = @transform_0, window_bounds = array<i64: 1, 32, 128>}, {transform_indices = @transform_1, window_bounds = array<i64: 1, 1, 128>}, {pipeline_mode = #tpu.pipeline_mode<synchronous>, transform_indices = @transform_2, window_bounds = array<i64: 3, 96, 32>}, {pipeline_mode = #tpu.pipeline_mode<synchronous>, transform_indices = @transform_3, window_bounds = array<i64: 3, 32, 1>}, {pipeline_mode = #tpu.pipeline_mode<synchronous>, transform_indices = @transform_4, window_bounds = array<i64: 3, 32, 32>}, {pipeline_mode = #tpu.pipeline_mode<synchronous>, transform_indices = @transform_5, window_bounds = array<i64: 3, 32, 1>}, {pipeline_mode = #tpu.pipeline_mode<synchronous>, transform_indices = @transform_6, window_bounds = array<i64: 16, 32>}, {pipeline_mode = #tpu.pipeline_mode<synchronous>, transform_indices = @transform_7, window_bounds = array<i64: 16, 1>}, {transform_indices = @transform_8, window_bounds = array<i64: 1, 16, 128>}]} {
    %c0 = arith.constant 0 : index
    %c0_0 = arith.constant 0 : index
    %c0_1 = arith.constant 0 : index
    %0 = vector.load %arg1[%c0, %c0_0, %c0_1] : memref<1x32x128xf32, #tpu.memory_space<vmem>>, vector<1x32x128xf32>
    %1 = vector.shape_cast %0 : vector<1x32x128xf32> to vector<32x128xf32>
    %c0_2 = arith.constant 0 : index
    %c0_3 = arith.constant 0 : index
    %c0_4 = arith.constant 0 : index
    %2 = vector.load %arg2[%c0_2, %c0_3, %c0_4] : memref<1x1x128xf32, #tpu.memory_space<vmem>>, vector<1x1x128xf32>
    %3 = vector.shape_cast %2 : vector<1x1x128xf32> to vector<1x128xf32>
    %4 = tpu.iota {dimensions = array<i32: 1>} : vector<1x128xi32>
    %c100_i32 = arith.constant 100 : i32
    %5 = vector.broadcast %c100_i32 : i32 to vector<1x128xi32>
    %6 = arith.cmpi slt, %4, %5 : vector<1x128xi32>
    %cst = arith.constant 0.000000e+00 : f32
    %7 = vector.shape_cast %6 : vector<1x128xi1> to vector<1x128xi1>
    %8 = vector.broadcast %7 : vector<1x128xi1> to vector<32x128xi1>
    %9 = vector.broadcast %cst : f32 to vector<32x128xf32>
    %10 = arith.select %8, %1, %9 : vector<32x128xi1>, vector<32x128xf32>
    %c0_5 = arith.constant 0 : index
    %c0_6 = arith.constant 0 : index
    %c0_7 = arith.constant 0 : index
    %11 = vector.load %arg3[%c0_5, %c0_6, %c0_7] : memref<3x96x32xf32, #tpu.memory_space<vmem>>, vector<1x96x32xf32>
    %12 = vector.shape_cast %11 : vector<1x96x32xf32> to vector<96x32xf32>
    %cst_8 = arith.constant dense<0.000000e+00> : vector<96x128xf32>
    %13 = tpu.matmul %12, %10, %cst_8 {dimension_numbers = #tpu.dot_dimension_numbers<[1], [0], [0], [1], [0, 0, 1, 1], [], []>} : vector<96x32xf32>, vector<32x128xf32>, vector<96x128xf32> -> vector<96x128xf32>
    %14 = vector.extract_strided_slice %13 {offsets = [0, 0], sizes = [32, 128], strides = [1, 1]} : vector<96x128xf32> to vector<32x128xf32>
    %c1_i32 = arith.constant 1 : i32
    %15 = tpu.dynamic_rotate %14 by %c1_i32 dim 1 : vector<32x128xf32>, i32 -> vector<32x128xf32>
    %16 = vector.extract_strided_slice %13 {offsets = [64, 0], sizes = [32, 128], strides = [1, 1]} : vector<96x128xf32> to vector<32x128xf32>
    %c127_i32 = arith.constant 127 : i32
    %17 = tpu.dynamic_rotate %16 by %c127_i32 dim 1 : vector<32x128xf32>, i32 -> vector<32x128xf32>
    %c1_i32_9 = arith.constant 1 : i32
    %18 = vector.broadcast %c1_i32_9 : i32 to vector<1x128xi32>
    %19 = arith.cmpi sge, %4, %18 : vector<1x128xi32>
    %cst_10 = arith.constant 0.000000e+00 : f32
    %20 = vector.shape_cast %19 : vector<1x128xi1> to vector<1x128xi1>
    %21 = vector.broadcast %20 : vector<1x128xi1> to vector<32x128xi1>
    %22 = vector.broadcast %cst_10 : f32 to vector<32x128xf32>
    %23 = arith.select %21, %15, %22 : vector<32x128xi1>, vector<32x128xf32>
    %24 = vector.extract_strided_slice %13 {offsets = [32, 0], sizes = [32, 128], strides = [1, 1]} : vector<96x128xf32> to vector<32x128xf32>
    %25 = arith.addf %23, %24 : vector<32x128xf32>
    %c127_i32_11 = arith.constant 127 : i32
    %26 = vector.broadcast %c127_i32_11 : i32 to vector<1x128xi32>
    %27 = arith.cmpi slt, %4, %26 : vector<1x128xi32>
    %cst_12 = arith.constant 0.000000e+00 : f32
    %28 = vector.shape_cast %27 : vector<1x128xi1> to vector<1x128xi1>
    %29 = vector.broadcast %28 : vector<1x128xi1> to vector<32x128xi1>
    %30 = vector.broadcast %cst_12 : f32 to vector<32x128xf32>
    %31 = arith.select %29, %17, %30 : vector<32x128xi1>, vector<32x128xf32>
    %32 = arith.addf %25, %31 : vector<32x128xf32>
    %c0_13 = arith.constant 0 : index
    %c0_14 = arith.constant 0 : index
    %c0_15 = arith.constant 0 : index
    %33 = vector.load %arg4[%c0_13, %c0_14, %c0_15] : memref<3x32x1xf32, #tpu.memory_space<vmem>>, vector<1x32x1xf32>
    %34 = vector.shape_cast %33 : vector<1x32x1xf32> to vector<32x1xf32>
    %35 = vector.broadcast %34 : vector<32x1xf32> to vector<32x128xf32>
    %36 = arith.addf %32, %35 : vector<32x128xf32>
    %cst_16 = arith.constant 0.000000e+00 : f32
    %37 = vector.broadcast %cst_16 : f32 to vector<32x128xf32>
    %38 = arith.maximumf %36, %37 : vector<32x128xf32>
    %c0_17 = arith.constant 0 : index
    %c0_18 = arith.constant 0 : index
    %c0_19 = arith.constant 0 : index
    %39 = vector.load %arg5[%c0_17, %c0_18, %c0_19] : memref<3x32x32xf32, #tpu.memory_space<vmem>>, vector<1x32x32xf32>
    %40 = vector.shape_cast %39 : vector<1x32x32xf32> to vector<32x32xf32>
    %cst_20 = arith.constant dense<0.000000e+00> : vector<32x128xf32>
    %41 = tpu.matmul %40, %38, %cst_20 {dimension_numbers = #tpu.dot_dimension_numbers<[1], [0], [0], [1], [0, 0, 1, 1], [], []>} : vector<32x32xf32>, vector<32x128xf32>, vector<32x128xf32> -> vector<32x128xf32>
    %c0_21 = arith.constant 0 : index
    %c0_22 = arith.constant 0 : index
    %c0_23 = arith.constant 0 : index
    %42 = vector.load %arg6[%c0_21, %c0_22, %c0_23] : memref<3x32x1xf32, #tpu.memory_space<vmem>>, vector<1x32x1xf32>
    %43 = vector.shape_cast %42 : vector<1x32x1xf32> to vector<32x1xf32>
    %44 = vector.broadcast %43 : vector<32x1xf32> to vector<32x128xf32>
    %45 = arith.addf %41, %44 : vector<32x128xf32>
    %46 = arith.addf %10, %45 : vector<32x128xf32>
    %47 = vector.broadcast %3 : vector<1x128xf32> to vector<32x128xf32>
    %48 = arith.mulf %46, %47 : vector<32x128xf32>
    %c1 = arith.constant 1 : index
    %c0_24 = arith.constant 0 : index
    %c0_25 = arith.constant 0 : index
    %49 = vector.load %arg3[%c1, %c0_24, %c0_25] : memref<3x96x32xf32, #tpu.memory_space<vmem>>, vector<1x96x32xf32>
    %50 = vector.shape_cast %49 : vector<1x96x32xf32> to vector<96x32xf32>
    %cst_26 = arith.constant dense<0.000000e+00> : vector<96x128xf32>
    %51 = tpu.matmul %50, %48, %cst_26 {dimension_numbers = #tpu.dot_dimension_numbers<[1], [0], [0], [1], [0, 0, 1, 1], [], []>} : vector<96x32xf32>, vector<32x128xf32>, vector<96x128xf32> -> vector<96x128xf32>
    %52 = vector.extract_strided_slice %51 {offsets = [0, 0], sizes = [32, 128], strides = [1, 1]} : vector<96x128xf32> to vector<32x128xf32>
    %c2_i32 = arith.constant 2 : i32
    %53 = tpu.dynamic_rotate %52 by %c2_i32 dim 1 : vector<32x128xf32>, i32 -> vector<32x128xf32>
    %54 = vector.extract_strided_slice %51 {offsets = [64, 0], sizes = [32, 128], strides = [1, 1]} : vector<96x128xf32> to vector<32x128xf32>
    %c126_i32 = arith.constant 126 : i32
    %55 = tpu.dynamic_rotate %54 by %c126_i32 dim 1 : vector<32x128xf32>, i32 -> vector<32x128xf32>
    %c2_i32_27 = arith.constant 2 : i32
    %56 = vector.broadcast %c2_i32_27 : i32 to vector<1x128xi32>
    %57 = arith.cmpi sge, %4, %56 : vector<1x128xi32>
    %cst_28 = arith.constant 0.000000e+00 : f32
    %58 = vector.shape_cast %57 : vector<1x128xi1> to vector<1x128xi1>
    %59 = vector.broadcast %58 : vector<1x128xi1> to vector<32x128xi1>
    %60 = vector.broadcast %cst_28 : f32 to vector<32x128xf32>
    %61 = arith.select %59, %53, %60 : vector<32x128xi1>, vector<32x128xf32>
    %62 = vector.extract_strided_slice %51 {offsets = [32, 0], sizes = [32, 128], strides = [1, 1]} : vector<96x128xf32> to vector<32x128xf32>
    %63 = arith.addf %61, %62 : vector<32x128xf32>
    %c126_i32_29 = arith.constant 126 : i32
    %64 = vector.broadcast %c126_i32_29 : i32 to vector<1x128xi32>
    %65 = arith.cmpi slt, %4, %64 : vector<1x128xi32>
    %cst_30 = arith.constant 0.000000e+00 : f32
    %66 = vector.shape_cast %65 : vector<1x128xi1> to vector<1x128xi1>
    %67 = vector.broadcast %66 : vector<1x128xi1> to vector<32x128xi1>
    %68 = vector.broadcast %cst_30 : f32 to vector<32x128xf32>
    %69 = arith.select %67, %55, %68 : vector<32x128xi1>, vector<32x128xf32>
    %70 = arith.addf %63, %69 : vector<32x128xf32>
    %c1_31 = arith.constant 1 : index
    %c0_32 = arith.constant 0 : index
    %c0_33 = arith.constant 0 : index
    %71 = vector.load %arg4[%c1_31, %c0_32, %c0_33] : memref<3x32x1xf32, #tpu.memory_space<vmem>>, vector<1x32x1xf32>
    %72 = vector.shape_cast %71 : vector<1x32x1xf32> to vector<32x1xf32>
    %73 = vector.broadcast %72 : vector<32x1xf32> to vector<32x128xf32>
    %74 = arith.addf %70, %73 : vector<32x128xf32>
    %cst_34 = arith.constant 0.000000e+00 : f32
    %75 = vector.broadcast %cst_34 : f32 to vector<32x128xf32>
    %76 = arith.maximumf %74, %75 : vector<32x128xf32>
    %c1_35 = arith.constant 1 : index
    %c0_36 = arith.constant 0 : index
    %c0_37 = arith.constant 0 : index
    %77 = vector.load %arg5[%c1_35, %c0_36, %c0_37] : memref<3x32x32xf32, #tpu.memory_space<vmem>>, vector<1x32x32xf32>
    %78 = vector.shape_cast %77 : vector<1x32x32xf32> to vector<32x32xf32>
    %cst_38 = arith.constant dense<0.000000e+00> : vector<32x128xf32>
    %79 = tpu.matmul %78, %76, %cst_38 {dimension_numbers = #tpu.dot_dimension_numbers<[1], [0], [0], [1], [0, 0, 1, 1], [], []>} : vector<32x32xf32>, vector<32x128xf32>, vector<32x128xf32> -> vector<32x128xf32>
    %c1_39 = arith.constant 1 : index
    %c0_40 = arith.constant 0 : index
    %c0_41 = arith.constant 0 : index
    %80 = vector.load %arg6[%c1_39, %c0_40, %c0_41] : memref<3x32x1xf32, #tpu.memory_space<vmem>>, vector<1x32x1xf32>
    %81 = vector.shape_cast %80 : vector<1x32x1xf32> to vector<32x1xf32>
    %82 = vector.broadcast %81 : vector<32x1xf32> to vector<32x128xf32>
    %83 = arith.addf %79, %82 : vector<32x128xf32>
    %84 = arith.addf %48, %83 : vector<32x128xf32>
    %85 = vector.broadcast %3 : vector<1x128xf32> to vector<32x128xf32>
    %86 = arith.mulf %84, %85 : vector<32x128xf32>
    %c2 = arith.constant 2 : index
    %c0_42 = arith.constant 0 : index
    %c0_43 = arith.constant 0 : index
    %87 = vector.load %arg3[%c2, %c0_42, %c0_43] : memref<3x96x32xf32, #tpu.memory_space<vmem>>, vector<1x96x32xf32>
    %88 = vector.shape_cast %87 : vector<1x96x32xf32> to vector<96x32xf32>
    %cst_44 = arith.constant dense<0.000000e+00> : vector<96x128xf32>
    %89 = tpu.matmul %88, %86, %cst_44 {dimension_numbers = #tpu.dot_dimension_numbers<[1], [0], [0], [1], [0, 0, 1, 1], [], []>} : vector<96x32xf32>, vector<32x128xf32>, vector<96x128xf32> -> vector<96x128xf32>
    %90 = vector.extract_strided_slice %89 {offsets = [0, 0], sizes = [32, 128], strides = [1, 1]} : vector<96x128xf32> to vector<32x128xf32>
    %c4_i32 = arith.constant 4 : i32
    %91 = tpu.dynamic_rotate %90 by %c4_i32 dim 1 : vector<32x128xf32>, i32 -> vector<32x128xf32>
    %92 = vector.extract_strided_slice %89 {offsets = [64, 0], sizes = [32, 128], strides = [1, 1]} : vector<96x128xf32> to vector<32x128xf32>
    %c124_i32 = arith.constant 124 : i32
    %93 = tpu.dynamic_rotate %92 by %c124_i32 dim 1 : vector<32x128xf32>, i32 -> vector<32x128xf32>
    %c4_i32_45 = arith.constant 4 : i32
    %94 = vector.broadcast %c4_i32_45 : i32 to vector<1x128xi32>
    %95 = arith.cmpi sge, %4, %94 : vector<1x128xi32>
    %cst_46 = arith.constant 0.000000e+00 : f32
    %96 = vector.shape_cast %95 : vector<1x128xi1> to vector<1x128xi1>
    %97 = vector.broadcast %96 : vector<1x128xi1> to vector<32x128xi1>
    %98 = vector.broadcast %cst_46 : f32 to vector<32x128xf32>
    %99 = arith.select %97, %91, %98 : vector<32x128xi1>, vector<32x128xf32>
    %100 = vector.extract_strided_slice %89 {offsets = [32, 0], sizes = [32, 128], strides = [1, 1]} : vector<96x128xf32> to vector<32x128xf32>
    %101 = arith.addf %99, %100 : vector<32x128xf32>
    %c124_i32_47 = arith.constant 124 : i32
    %102 = vector.broadcast %c124_i32_47 : i32 to vector<1x128xi32>
    %103 = arith.cmpi slt, %4, %102 : vector<1x128xi32>
    %cst_48 = arith.constant 0.000000e+00 : f32
    %104 = vector.shape_cast %103 : vector<1x128xi1> to vector<1x128xi1>
    %105 = vector.broadcast %104 : vector<1x128xi1> to vector<32x128xi1>
    %106 = vector.broadcast %cst_48 : f32 to vector<32x128xf32>
    %107 = arith.select %105, %93, %106 : vector<32x128xi1>, vector<32x128xf32>
    %108 = arith.addf %101, %107 : vector<32x128xf32>
    %c2_49 = arith.constant 2 : index
    %c0_50 = arith.constant 0 : index
    %c0_51 = arith.constant 0 : index
    %109 = vector.load %arg4[%c2_49, %c0_50, %c0_51] : memref<3x32x1xf32, #tpu.memory_space<vmem>>, vector<1x32x1xf32>
    %110 = vector.shape_cast %109 : vector<1x32x1xf32> to vector<32x1xf32>
    %111 = vector.broadcast %110 : vector<32x1xf32> to vector<32x128xf32>
    %112 = arith.addf %108, %111 : vector<32x128xf32>
    %cst_52 = arith.constant 0.000000e+00 : f32
    %113 = vector.broadcast %cst_52 : f32 to vector<32x128xf32>
    %114 = arith.maximumf %112, %113 : vector<32x128xf32>
    %c2_53 = arith.constant 2 : index
    %c0_54 = arith.constant 0 : index
    %c0_55 = arith.constant 0 : index
    %115 = vector.load %arg5[%c2_53, %c0_54, %c0_55] : memref<3x32x32xf32, #tpu.memory_space<vmem>>, vector<1x32x32xf32>
    %116 = vector.shape_cast %115 : vector<1x32x32xf32> to vector<32x32xf32>
    %cst_56 = arith.constant dense<0.000000e+00> : vector<32x128xf32>
    %117 = tpu.matmul %116, %114, %cst_56 {dimension_numbers = #tpu.dot_dimension_numbers<[1], [0], [0], [1], [0, 0, 1, 1], [], []>} : vector<32x32xf32>, vector<32x128xf32>, vector<32x128xf32> -> vector<32x128xf32>
    %c2_57 = arith.constant 2 : index
    %c0_58 = arith.constant 0 : index
    %c0_59 = arith.constant 0 : index
    %118 = vector.load %arg6[%c2_57, %c0_58, %c0_59] : memref<3x32x1xf32, #tpu.memory_space<vmem>>, vector<1x32x1xf32>
    %119 = vector.shape_cast %118 : vector<1x32x1xf32> to vector<32x1xf32>
    %120 = vector.broadcast %119 : vector<32x1xf32> to vector<32x128xf32>
    %121 = arith.addf %117, %120 : vector<32x128xf32>
    %122 = arith.addf %86, %121 : vector<32x128xf32>
    %123 = vector.broadcast %3 : vector<1x128xf32> to vector<32x128xf32>
    %124 = arith.mulf %122, %123 : vector<32x128xf32>
    %c0_60 = arith.constant 0 : index
    %c0_61 = arith.constant 0 : index
    %125 = vector.load %arg7[%c0_60, %c0_61] : memref<16x32xf32, #tpu.memory_space<vmem>>, vector<16x32xf32>
    %cst_62 = arith.constant dense<0.000000e+00> : vector<16x128xf32>
    %126 = tpu.matmul %125, %124, %cst_62 {dimension_numbers = #tpu.dot_dimension_numbers<[1], [0], [0], [1], [0, 0, 1, 1], [], []>} : vector<16x32xf32>, vector<32x128xf32>, vector<16x128xf32> -> vector<16x128xf32>
    %c0_63 = arith.constant 0 : index
    %c0_64 = arith.constant 0 : index
    %127 = vector.load %arg8[%c0_63, %c0_64] : memref<16x1xf32, #tpu.memory_space<vmem>>, vector<16x1xf32>
    %128 = vector.broadcast %127 : vector<16x1xf32> to vector<16x128xf32>
    %129 = arith.addf %126, %128 : vector<16x128xf32>
    %130 = vector.broadcast %3 : vector<1x128xf32> to vector<16x128xf32>
    %131 = arith.mulf %129, %130 : vector<16x128xf32>
    %c0_65 = arith.constant 0 : index
    %c0_66 = arith.constant 0 : index
    %c0_67 = arith.constant 0 : index
    %132 = vector.load %arg9[%c0_65, %c0_66, %c0_67] : memref<1x16x128xf32, #tpu.memory_space<vmem>>, vector<1x16x128xf32>
    %133 = vector.shape_cast %132 : vector<1x16x128xf32> to vector<16x128xf32>
    %134 = vector.shape_cast %131 : vector<16x128xf32> to vector<1x16x128xf32>
    tpu.vector_store %arg9[%c0_65, %c0_66, %c0_67], %134 {strides = array<i32>} : memref<1x16x128xf32, #tpu.memory_space<vmem>>, vector<1x16x128xf32>,
    return
  }
  func.func @transform_0(%arg0: i32) -> (i32, i32, i32) {
    %c0_i32 = arith.constant 0 : i32
    %c0_i32_0 = arith.constant 0 : i32
    %c0_i32_1 = arith.constant 0 : i32
    return %arg0, %c0_i32, %c0_i32_0 : i32, i32, i32
  }
  func.func @transform_1(%arg0: i32) -> (i32, i32, i32) {
    %c0_i32 = arith.constant 0 : i32
    %c0_i32_0 = arith.constant 0 : i32
    %c0_i32_1 = arith.constant 0 : i32
    return %arg0, %c0_i32, %c0_i32_0 : i32, i32, i32
  }
  func.func @transform_2(%arg0: i32) -> (i32, i32, i32) {
    %c0_i32 = arith.constant 0 : i32
    %c0_i32_0 = arith.constant 0 : i32
    %c0_i32_1 = arith.constant 0 : i32
    %c0_i32_2 = arith.constant 0 : i32
    return %c0_i32, %c0_i32_0, %c0_i32_1 : i32, i32, i32
  }
  func.func @transform_3(%arg0: i32) -> (i32, i32, i32) {
    %c0_i32 = arith.constant 0 : i32
    %c0_i32_0 = arith.constant 0 : i32
    %c0_i32_1 = arith.constant 0 : i32
    %c0_i32_2 = arith.constant 0 : i32
    return %c0_i32, %c0_i32_0, %c0_i32_1 : i32, i32, i32
  }
  func.func @transform_4(%arg0: i32) -> (i32, i32, i32) {
    %c0_i32 = arith.constant 0 : i32
    %c0_i32_0 = arith.constant 0 : i32
    %c0_i32_1 = arith.constant 0 : i32
    %c0_i32_2 = arith.constant 0 : i32
    return %c0_i32, %c0_i32_0, %c0_i32_1 : i32, i32, i32
  }
  func.func @transform_5(%arg0: i32) -> (i32, i32, i32) {
    %c0_i32 = arith.constant 0 : i32
    %c0_i32_0 = arith.constant 0 : i32
    %c0_i32_1 = arith.constant 0 : i32
    %c0_i32_2 = arith.constant 0 : i32
    return %c0_i32, %c0_i32_0, %c0_i32_1 : i32, i32, i32
  }
  func.func @transform_6(%arg0: i32) -> (i32, i32) {
    %c0_i32 = arith.constant 0 : i32
    %c0_i32_0 = arith.constant 0 : i32
    %c0_i32_1 = arith.constant 0 : i32
    return %c0_i32, %c0_i32_0 : i32, i32
  }
  func.func @transform_7(%arg0: i32) -> (i32, i32) {
    %c0_i32 = arith.constant 0 : i32
    %c0_i32_0 = arith.constant 0 : i32
    %c0_i32_1 = arith.constant 0 : i32
    return %c0_i32, %c0_i32_0 : i32, i32
  }
  func.func @transform_8(%arg0: i32) -> (i32, i32, i32) {
    %c0_i32 = arith.constant 0 : i32
    %c0_i32_0 = arith.constant 0 : i32
    %c0_i32_1 = arith.constant 0 : i32
    return %arg0, %c0_i32, %c0_i32_0 : i32, i32, i32
  }
}

module attributes {stable_mosaic.version = 11 : i64} {
  func.func @_in_conv_kernel(%arg0: i32, %arg1: i32, %arg2: i32, %arg3: memref<1x4x128xf32, #tpu.memory_space<vmem>>, %arg4: memref<32x4xf32, #tpu.memory_space<vmem>>, %arg5: memref<32x1xf32, #tpu.memory_space<vmem>>, %arg6: memref<1x32x128xf32, #tpu.memory_space<vmem>>, %arg7: memref<32x128xf32, #tpu.memory_space<vmem>>) attributes {dimension_semantics = [#tpu.dimension_semantics<parallel>, #tpu.dimension_semantics<parallel>, #tpu.dimension_semantics<arbitrary>], iteration_bounds = array<i64: 2, 1, 1>, scalar_prefetch = 0 : i64, scratch_operands = 1 : i64, tpu.core_type = #tpu.core_type<tc>, window_params = [{transform_indices = @transform_0, window_bounds = array<i64: 1, 4, 128>}, {transform_indices = @transform_1, window_bounds = array<i64: 32, 4>}, {pipeline_mode = #tpu.pipeline_mode<synchronous>, transform_indices = @transform_2, window_bounds = array<i64: 32, 1>}, {transform_indices = @transform_3, window_bounds = array<i64: 1, 32, 128>}]} {
    %c0_i32 = arith.constant 0 : i32
    %0 = arith.cmpi eq, %arg2, %c0_i32 : i32
    %1 = arith.extui %0 : i1 to i32
    %c0_i32_0 = arith.constant 0 : i32
    %2 = arith.cmpi ne, %1, %c0_i32_0 : i32
    scf.if %2 {
      %cst_11 = arith.constant 0.000000e+00 : f32
      %13 = vector.broadcast %cst_11 : f32 to vector<32x128xf32>
      %c0_12 = arith.constant 0 : index
      %c0_13 = arith.constant 0 : index
      %14 = vector.load %arg7[%c0_12, %c0_13] : memref<32x128xf32, #tpu.memory_space<vmem>>, vector<32x128xf32>
      tpu.vector_store %arg7[%c0_12, %c0_13], %13 {strides = array<i32>} : memref<32x128xf32, #tpu.memory_space<vmem>>, vector<32x128xf32>,
    } else {
    }
    %c0 = arith.constant 0 : index
    %c0_1 = arith.constant 0 : index
    %3 = vector.load %arg7[%c0, %c0_1] : memref<32x128xf32, #tpu.memory_space<vmem>>, vector<32x128xf32>
    %c0_2 = arith.constant 0 : index
    %c0_3 = arith.constant 0 : index
    %4 = vector.load %arg4[%c0_2, %c0_3] : memref<32x4xf32, #tpu.memory_space<vmem>>, vector<32x4xf32>
    %c0_4 = arith.constant 0 : index
    %c0_5 = arith.constant 0 : index
    %c0_6 = arith.constant 0 : index
    %5 = vector.load %arg3[%c0_4, %c0_5, %c0_6] : memref<1x4x128xf32, #tpu.memory_space<vmem>>, vector<1x4x128xf32>
    %6 = vector.shape_cast %5 : vector<1x4x128xf32> to vector<4x128xf32>
    %cst = arith.constant dense<0.000000e+00> : vector<32x128xf32>
    %7 = tpu.matmul %4, %6, %cst {dimension_numbers = #tpu.dot_dimension_numbers<[1], [0], [0], [1], [0, 0, 1, 1], [], []>} : vector<32x4xf32>, vector<4x128xf32>, vector<32x128xf32> -> vector<32x128xf32>
    %8 = arith.addf %3, %7 : vector<32x128xf32>
    %c0_7 = arith.constant 0 : index
    %c0_8 = arith.constant 0 : index
    %9 = vector.load %arg7[%c0_7, %c0_8] : memref<32x128xf32, #tpu.memory_space<vmem>>, vector<32x128xf32>
    tpu.vector_store %arg7[%c0_7, %c0_8], %8 {strides = array<i32>} : memref<32x128xf32, #tpu.memory_space<vmem>>, vector<32x128xf32>,
    %c0_i32_9 = arith.constant 0 : i32
    %10 = arith.cmpi eq, %arg2, %c0_i32_9 : i32
    %11 = arith.extui %10 : i1 to i32
    %c0_i32_10 = arith.constant 0 : i32
    %12 = arith.cmpi ne, %11, %c0_i32_10 : i32
    scf.if %12 {
      %c0_11 = arith.constant 0 : index
      %c0_12 = arith.constant 0 : index
      %13 = vector.load %arg7[%c0_11, %c0_12] : memref<32x128xf32, #tpu.memory_space<vmem>>, vector<32x128xf32>
      %c0_13 = arith.constant 0 : index
      %c0_14 = arith.constant 0 : index
      %14 = vector.load %arg5[%c0_13, %c0_14] : memref<32x1xf32, #tpu.memory_space<vmem>>, vector<32x1xf32>
      %15 = vector.broadcast %14 : vector<32x1xf32> to vector<32x128xf32>
      %16 = arith.addf %13, %15 : vector<32x128xf32>
      %c0_15 = arith.constant 0 : index
      %c0_16 = arith.constant 0 : index
      %c0_17 = arith.constant 0 : index
      %17 = vector.load %arg6[%c0_15, %c0_16, %c0_17] : memref<1x32x128xf32, #tpu.memory_space<vmem>>, vector<1x32x128xf32>
      %18 = vector.shape_cast %17 : vector<1x32x128xf32> to vector<32x128xf32>
      %19 = vector.shape_cast %16 : vector<32x128xf32> to vector<1x32x128xf32>
      tpu.vector_store %arg6[%c0_15, %c0_16, %c0_17], %19 {strides = array<i32>} : memref<1x32x128xf32, #tpu.memory_space<vmem>>, vector<1x32x128xf32>,
    } else {
    }
    return
  }
  func.func @transform_0(%arg0: i32, %arg1: i32, %arg2: i32) -> (i32, i32, i32) {
    %c0_i32 = arith.constant 0 : i32
    return %arg0, %arg2, %arg1 : i32, i32, i32
  }
  func.func @transform_1(%arg0: i32, %arg1: i32, %arg2: i32) -> (i32, i32) {
    %c0_i32 = arith.constant 0 : i32
    %c0_i32_0 = arith.constant 0 : i32
    return %c0_i32, %arg2 : i32, i32
  }
  func.func @transform_2(%arg0: i32, %arg1: i32, %arg2: i32) -> (i32, i32) {
    %c0_i32 = arith.constant 0 : i32
    %c0_i32_0 = arith.constant 0 : i32
    %c0_i32_1 = arith.constant 0 : i32
    return %c0_i32, %c0_i32_0 : i32, i32
  }
  func.func @transform_3(%arg0: i32, %arg1: i32, %arg2: i32) -> (i32, i32, i32) {
    %c0_i32 = arith.constant 0 : i32
    %c0_i32_0 = arith.constant 0 : i32
    return %arg0, %c0_i32, %arg1 : i32, i32, i32
  }
}

module attributes {stable_mosaic.version = 11 : i64} {
  func.func @_stack_kernel(%arg0: i32, %arg1: memref<1x16x128xf32, #tpu.memory_space<vmem>>, %arg2: memref<1x1x128xf32, #tpu.memory_space<vmem>>, %arg3: memref<32x16xf32, #tpu.memory_space<vmem>>, %arg4: memref<32x1xf32, #tpu.memory_space<vmem>>, %arg5: memref<3x96x32xf32, #tpu.memory_space<vmem>>, %arg6: memref<3x32x1xf32, #tpu.memory_space<vmem>>, %arg7: memref<3x32x32xf32, #tpu.memory_space<vmem>>, %arg8: memref<3x32x1xf32, #tpu.memory_space<vmem>>, %arg9: memref<16x32xf32, #tpu.memory_space<vmem>>, %arg10: memref<16x1xf32, #tpu.memory_space<vmem>>, %arg11: memref<1x16x128xf32, #tpu.memory_space<vmem>>) attributes {dimension_semantics = [#tpu.dimension_semantics<parallel>], iteration_bounds = array<i64: 2>, scalar_prefetch = 0 : i64, scratch_operands = 0 : i64, tpu.core_type = #tpu.core_type<tc>, window_params = [{transform_indices = @transform_0, window_bounds = array<i64: 1, 16, 128>}, {transform_indices = @transform_1, window_bounds = array<i64: 1, 1, 128>}, {pipeline_mode = #tpu.pipeline_mode<synchronous>, transform_indices = @transform_2, window_bounds = array<i64: 32, 16>}, {pipeline_mode = #tpu.pipeline_mode<synchronous>, transform_indices = @transform_3, window_bounds = array<i64: 32, 1>}, {pipeline_mode = #tpu.pipeline_mode<synchronous>, transform_indices = @transform_4, window_bounds = array<i64: 3, 96, 32>}, {pipeline_mode = #tpu.pipeline_mode<synchronous>, transform_indices = @transform_5, window_bounds = array<i64: 3, 32, 1>}, {pipeline_mode = #tpu.pipeline_mode<synchronous>, transform_indices = @transform_6, window_bounds = array<i64: 3, 32, 32>}, {pipeline_mode = #tpu.pipeline_mode<synchronous>, transform_indices = @transform_7, window_bounds = array<i64: 3, 32, 1>}, {pipeline_mode = #tpu.pipeline_mode<synchronous>, transform_indices = @transform_8, window_bounds = array<i64: 16, 32>}, {pipeline_mode = #tpu.pipeline_mode<synchronous>, transform_indices = @transform_9, window_bounds = array<i64: 16, 1>}, {transform_indices = @transform_10, window_bounds = array<i64: 1, 16, 128>}]} {
    %c0 = arith.constant 0 : index
    %c0_0 = arith.constant 0 : index
    %c0_1 = arith.constant 0 : index
    %0 = vector.load %arg1[%c0, %c0_0, %c0_1] : memref<1x16x128xf32, #tpu.memory_space<vmem>>, vector<1x16x128xf32>
    %1 = vector.shape_cast %0 : vector<1x16x128xf32> to vector<16x128xf32>
    %c0_2 = arith.constant 0 : index
    %c0_3 = arith.constant 0 : index
    %c0_4 = arith.constant 0 : index
    %2 = vector.load %arg2[%c0_2, %c0_3, %c0_4] : memref<1x1x128xf32, #tpu.memory_space<vmem>>, vector<1x1x128xf32>
    %3 = vector.shape_cast %2 : vector<1x1x128xf32> to vector<1x128xf32>
    %4 = tpu.iota {dimensions = array<i32: 1>} : vector<1x128xi32>
    %5 = tpu.iota {dimensions = array<i32: 0>} : vector<16x1xi32>
    %c10_i32 = arith.constant 10 : i32
    %6 = vector.broadcast %c10_i32 : i32 to vector<16x1xi32>
    %7 = arith.cmpi slt, %5, %6 : vector<16x1xi32>
    %cst = arith.constant -3.40282347E+38 : f32
    %8 = vector.shape_cast %7 : vector<16x1xi1> to vector<16x1xi1>
    %9 = vector.broadcast %8 : vector<16x1xi1> to vector<16x128xi1>
    %10 = vector.broadcast %cst : f32 to vector<16x128xf32>
    %11 = arith.select %9, %1, %10 : vector<16x128xi1>, vector<16x128xf32>
    %cst_5 = arith.constant dense<0xFF800000> : vector<128xf32>
    %12 = vector.multi_reduction <maximumf>, %11, %cst_5 [0] : vector<16x128xf32> to vector<128xf32>
    %13 = vector.shape_cast %12 : vector<128xf32> to vector<1x128xf32>
    %14 = vector.broadcast %13 : vector<1x128xf32> to vector<16x128xf32>
    %15 = arith.subf %1, %14 : vector<16x128xf32>
    %16 = math.exp %15 : vector<16x128xf32>
    %cst_6 = arith.constant 0.000000e+00 : f32
    %17 = vector.shape_cast %7 : vector<16x1xi1> to vector<16x1xi1>
    %18 = vector.broadcast %17 : vector<16x1xi1> to vector<16x128xi1>
    %19 = vector.broadcast %cst_6 : f32 to vector<16x128xf32>
    %20 = arith.select %18, %16, %19 : vector<16x128xi1>, vector<16x128xf32>
    %cst_7 = arith.constant dense<0.000000e+00> : vector<128xf32>
    %21 = vector.multi_reduction <add>, %20, %cst_7 [0] : vector<16x128xf32> to vector<128xf32>
    %22 = vector.shape_cast %21 : vector<128xf32> to vector<1x128xf32>
    %23 = tpu.reciprocal %22 : vector<1x128xf32> -> vector<1x128xf32>
    %24 = vector.broadcast %23 : vector<1x128xf32> to vector<16x128xf32>
    %25 = arith.mulf %20, %24 : vector<16x128xf32>
    %26 = vector.broadcast %3 : vector<1x128xf32> to vector<16x128xf32>
    %27 = arith.mulf %25, %26 : vector<16x128xf32>
    %c0_8 = arith.constant 0 : index
    %c0_9 = arith.constant 0 : index
    %28 = vector.load %arg3[%c0_8, %c0_9] : memref<32x16xf32, #tpu.memory_space<vmem>>, vector<32x16xf32>
    %cst_10 = arith.constant dense<0.000000e+00> : vector<32x128xf32>
    %29 = tpu.matmul %28, %27, %cst_10 {dimension_numbers = #tpu.dot_dimension_numbers<[1], [0], [0], [1], [0, 0, 1, 1], [], []>} : vector<32x16xf32>, vector<16x128xf32>, vector<32x128xf32> -> vector<32x128xf32>
    %c0_11 = arith.constant 0 : index
    %c0_12 = arith.constant 0 : index
    %30 = vector.load %arg4[%c0_11, %c0_12] : memref<32x1xf32, #tpu.memory_space<vmem>>, vector<32x1xf32>
    %31 = vector.broadcast %30 : vector<32x1xf32> to vector<32x128xf32>
    %32 = arith.addf %29, %31 : vector<32x128xf32>
    %c100_i32 = arith.constant 100 : i32
    %33 = vector.broadcast %c100_i32 : i32 to vector<1x128xi32>
    %34 = arith.cmpi slt, %4, %33 : vector<1x128xi32>
    %cst_13 = arith.constant 0.000000e+00 : f32
    %35 = vector.shape_cast %34 : vector<1x128xi1> to vector<1x128xi1>
    %36 = vector.broadcast %35 : vector<1x128xi1> to vector<32x128xi1>
    %37 = vector.broadcast %cst_13 : f32 to vector<32x128xf32>
    %38 = arith.select %36, %32, %37 : vector<32x128xi1>, vector<32x128xf32>
    %c0_14 = arith.constant 0 : index
    %c0_15 = arith.constant 0 : index
    %c0_16 = arith.constant 0 : index
    %39 = vector.load %arg5[%c0_14, %c0_15, %c0_16] : memref<3x96x32xf32, #tpu.memory_space<vmem>>, vector<1x96x32xf32>
    %40 = vector.shape_cast %39 : vector<1x96x32xf32> to vector<96x32xf32>
    %cst_17 = arith.constant dense<0.000000e+00> : vector<96x128xf32>
    %41 = tpu.matmul %40, %38, %cst_17 {dimension_numbers = #tpu.dot_dimension_numbers<[1], [0], [0], [1], [0, 0, 1, 1], [], []>} : vector<96x32xf32>, vector<32x128xf32>, vector<96x128xf32> -> vector<96x128xf32>
    %42 = vector.extract_strided_slice %41 {offsets = [0, 0], sizes = [32, 128], strides = [1, 1]} : vector<96x128xf32> to vector<32x128xf32>
    %c1_i32 = arith.constant 1 : i32
    %43 = tpu.dynamic_rotate %42 by %c1_i32 dim 1 : vector<32x128xf32>, i32 -> vector<32x128xf32>
    %44 = vector.extract_strided_slice %41 {offsets = [64, 0], sizes = [32, 128], strides = [1, 1]} : vector<96x128xf32> to vector<32x128xf32>
    %c127_i32 = arith.constant 127 : i32
    %45 = tpu.dynamic_rotate %44 by %c127_i32 dim 1 : vector<32x128xf32>, i32 -> vector<32x128xf32>
    %c1_i32_18 = arith.constant 1 : i32
    %46 = vector.broadcast %c1_i32_18 : i32 to vector<1x128xi32>
    %47 = arith.cmpi sge, %4, %46 : vector<1x128xi32>
    %cst_19 = arith.constant 0.000000e+00 : f32
    %48 = vector.shape_cast %47 : vector<1x128xi1> to vector<1x128xi1>
    %49 = vector.broadcast %48 : vector<1x128xi1> to vector<32x128xi1>
    %50 = vector.broadcast %cst_19 : f32 to vector<32x128xf32>
    %51 = arith.select %49, %43, %50 : vector<32x128xi1>, vector<32x128xf32>
    %52 = vector.extract_strided_slice %41 {offsets = [32, 0], sizes = [32, 128], strides = [1, 1]} : vector<96x128xf32> to vector<32x128xf32>
    %53 = arith.addf %51, %52 : vector<32x128xf32>
    %c127_i32_20 = arith.constant 127 : i32
    %54 = vector.broadcast %c127_i32_20 : i32 to vector<1x128xi32>
    %55 = arith.cmpi slt, %4, %54 : vector<1x128xi32>
    %cst_21 = arith.constant 0.000000e+00 : f32
    %56 = vector.shape_cast %55 : vector<1x128xi1> to vector<1x128xi1>
    %57 = vector.broadcast %56 : vector<1x128xi1> to vector<32x128xi1>
    %58 = vector.broadcast %cst_21 : f32 to vector<32x128xf32>
    %59 = arith.select %57, %45, %58 : vector<32x128xi1>, vector<32x128xf32>
    %60 = arith.addf %53, %59 : vector<32x128xf32>
    %c0_22 = arith.constant 0 : index
    %c0_23 = arith.constant 0 : index
    %c0_24 = arith.constant 0 : index
    %61 = vector.load %arg6[%c0_22, %c0_23, %c0_24] : memref<3x32x1xf32, #tpu.memory_space<vmem>>, vector<1x32x1xf32>
    %62 = vector.shape_cast %61 : vector<1x32x1xf32> to vector<32x1xf32>
    %63 = vector.broadcast %62 : vector<32x1xf32> to vector<32x128xf32>
    %64 = arith.addf %60, %63 : vector<32x128xf32>
    %cst_25 = arith.constant 0.000000e+00 : f32
    %65 = vector.broadcast %cst_25 : f32 to vector<32x128xf32>
    %66 = arith.maximumf %64, %65 : vector<32x128xf32>
    %c0_26 = arith.constant 0 : index
    %c0_27 = arith.constant 0 : index
    %c0_28 = arith.constant 0 : index
    %67 = vector.load %arg7[%c0_26, %c0_27, %c0_28] : memref<3x32x32xf32, #tpu.memory_space<vmem>>, vector<1x32x32xf32>
    %68 = vector.shape_cast %67 : vector<1x32x32xf32> to vector<32x32xf32>
    %cst_29 = arith.constant dense<0.000000e+00> : vector<32x128xf32>
    %69 = tpu.matmul %68, %66, %cst_29 {dimension_numbers = #tpu.dot_dimension_numbers<[1], [0], [0], [1], [0, 0, 1, 1], [], []>} : vector<32x32xf32>, vector<32x128xf32>, vector<32x128xf32> -> vector<32x128xf32>
    %c0_30 = arith.constant 0 : index
    %c0_31 = arith.constant 0 : index
    %c0_32 = arith.constant 0 : index
    %70 = vector.load %arg8[%c0_30, %c0_31, %c0_32] : memref<3x32x1xf32, #tpu.memory_space<vmem>>, vector<1x32x1xf32>
    %71 = vector.shape_cast %70 : vector<1x32x1xf32> to vector<32x1xf32>
    %72 = vector.broadcast %71 : vector<32x1xf32> to vector<32x128xf32>
    %73 = arith.addf %69, %72 : vector<32x128xf32>
    %74 = arith.addf %38, %73 : vector<32x128xf32>
    %75 = vector.broadcast %3 : vector<1x128xf32> to vector<32x128xf32>
    %76 = arith.mulf %74, %75 : vector<32x128xf32>
    %c1 = arith.constant 1 : index
    %c0_33 = arith.constant 0 : index
    %c0_34 = arith.constant 0 : index
    %77 = vector.load %arg5[%c1, %c0_33, %c0_34] : memref<3x96x32xf32, #tpu.memory_space<vmem>>, vector<1x96x32xf32>
    %78 = vector.shape_cast %77 : vector<1x96x32xf32> to vector<96x32xf32>
    %cst_35 = arith.constant dense<0.000000e+00> : vector<96x128xf32>
    %79 = tpu.matmul %78, %76, %cst_35 {dimension_numbers = #tpu.dot_dimension_numbers<[1], [0], [0], [1], [0, 0, 1, 1], [], []>} : vector<96x32xf32>, vector<32x128xf32>, vector<96x128xf32> -> vector<96x128xf32>
    %80 = vector.extract_strided_slice %79 {offsets = [0, 0], sizes = [32, 128], strides = [1, 1]} : vector<96x128xf32> to vector<32x128xf32>
    %c2_i32 = arith.constant 2 : i32
    %81 = tpu.dynamic_rotate %80 by %c2_i32 dim 1 : vector<32x128xf32>, i32 -> vector<32x128xf32>
    %82 = vector.extract_strided_slice %79 {offsets = [64, 0], sizes = [32, 128], strides = [1, 1]} : vector<96x128xf32> to vector<32x128xf32>
    %c126_i32 = arith.constant 126 : i32
    %83 = tpu.dynamic_rotate %82 by %c126_i32 dim 1 : vector<32x128xf32>, i32 -> vector<32x128xf32>
    %c2_i32_36 = arith.constant 2 : i32
    %84 = vector.broadcast %c2_i32_36 : i32 to vector<1x128xi32>
    %85 = arith.cmpi sge, %4, %84 : vector<1x128xi32>
    %cst_37 = arith.constant 0.000000e+00 : f32
    %86 = vector.shape_cast %85 : vector<1x128xi1> to vector<1x128xi1>
    %87 = vector.broadcast %86 : vector<1x128xi1> to vector<32x128xi1>
    %88 = vector.broadcast %cst_37 : f32 to vector<32x128xf32>
    %89 = arith.select %87, %81, %88 : vector<32x128xi1>, vector<32x128xf32>
    %90 = vector.extract_strided_slice %79 {offsets = [32, 0], sizes = [32, 128], strides = [1, 1]} : vector<96x128xf32> to vector<32x128xf32>
    %91 = arith.addf %89, %90 : vector<32x128xf32>
    %c126_i32_38 = arith.constant 126 : i32
    %92 = vector.broadcast %c126_i32_38 : i32 to vector<1x128xi32>
    %93 = arith.cmpi slt, %4, %92 : vector<1x128xi32>
    %cst_39 = arith.constant 0.000000e+00 : f32
    %94 = vector.shape_cast %93 : vector<1x128xi1> to vector<1x128xi1>
    %95 = vector.broadcast %94 : vector<1x128xi1> to vector<32x128xi1>
    %96 = vector.broadcast %cst_39 : f32 to vector<32x128xf32>
    %97 = arith.select %95, %83, %96 : vector<32x128xi1>, vector<32x128xf32>
    %98 = arith.addf %91, %97 : vector<32x128xf32>
    %c1_40 = arith.constant 1 : index
    %c0_41 = arith.constant 0 : index
    %c0_42 = arith.constant 0 : index
    %99 = vector.load %arg6[%c1_40, %c0_41, %c0_42] : memref<3x32x1xf32, #tpu.memory_space<vmem>>, vector<1x32x1xf32>
    %100 = vector.shape_cast %99 : vector<1x32x1xf32> to vector<32x1xf32>
    %101 = vector.broadcast %100 : vector<32x1xf32> to vector<32x128xf32>
    %102 = arith.addf %98, %101 : vector<32x128xf32>
    %cst_43 = arith.constant 0.000000e+00 : f32
    %103 = vector.broadcast %cst_43 : f32 to vector<32x128xf32>
    %104 = arith.maximumf %102, %103 : vector<32x128xf32>
    %c1_44 = arith.constant 1 : index
    %c0_45 = arith.constant 0 : index
    %c0_46 = arith.constant 0 : index
    %105 = vector.load %arg7[%c1_44, %c0_45, %c0_46] : memref<3x32x32xf32, #tpu.memory_space<vmem>>, vector<1x32x32xf32>
    %106 = vector.shape_cast %105 : vector<1x32x32xf32> to vector<32x32xf32>
    %cst_47 = arith.constant dense<0.000000e+00> : vector<32x128xf32>
    %107 = tpu.matmul %106, %104, %cst_47 {dimension_numbers = #tpu.dot_dimension_numbers<[1], [0], [0], [1], [0, 0, 1, 1], [], []>} : vector<32x32xf32>, vector<32x128xf32>, vector<32x128xf32> -> vector<32x128xf32>
    %c1_48 = arith.constant 1 : index
    %c0_49 = arith.constant 0 : index
    %c0_50 = arith.constant 0 : index
    %108 = vector.load %arg8[%c1_48, %c0_49, %c0_50] : memref<3x32x1xf32, #tpu.memory_space<vmem>>, vector<1x32x1xf32>
    %109 = vector.shape_cast %108 : vector<1x32x1xf32> to vector<32x1xf32>
    %110 = vector.broadcast %109 : vector<32x1xf32> to vector<32x128xf32>
    %111 = arith.addf %107, %110 : vector<32x128xf32>
    %112 = arith.addf %76, %111 : vector<32x128xf32>
    %113 = vector.broadcast %3 : vector<1x128xf32> to vector<32x128xf32>
    %114 = arith.mulf %112, %113 : vector<32x128xf32>
    %c2 = arith.constant 2 : index
    %c0_51 = arith.constant 0 : index
    %c0_52 = arith.constant 0 : index
    %115 = vector.load %arg5[%c2, %c0_51, %c0_52] : memref<3x96x32xf32, #tpu.memory_space<vmem>>, vector<1x96x32xf32>
    %116 = vector.shape_cast %115 : vector<1x96x32xf32> to vector<96x32xf32>
    %cst_53 = arith.constant dense<0.000000e+00> : vector<96x128xf32>
    %117 = tpu.matmul %116, %114, %cst_53 {dimension_numbers = #tpu.dot_dimension_numbers<[1], [0], [0], [1], [0, 0, 1, 1], [], []>} : vector<96x32xf32>, vector<32x128xf32>, vector<96x128xf32> -> vector<96x128xf32>
    %118 = vector.extract_strided_slice %117 {offsets = [0, 0], sizes = [32, 128], strides = [1, 1]} : vector<96x128xf32> to vector<32x128xf32>
    %c4_i32 = arith.constant 4 : i32
    %119 = tpu.dynamic_rotate %118 by %c4_i32 dim 1 : vector<32x128xf32>, i32 -> vector<32x128xf32>
    %120 = vector.extract_strided_slice %117 {offsets = [64, 0], sizes = [32, 128], strides = [1, 1]} : vector<96x128xf32> to vector<32x128xf32>
    %c124_i32 = arith.constant 124 : i32
    %121 = tpu.dynamic_rotate %120 by %c124_i32 dim 1 : vector<32x128xf32>, i32 -> vector<32x128xf32>
    %c4_i32_54 = arith.constant 4 : i32
    %122 = vector.broadcast %c4_i32_54 : i32 to vector<1x128xi32>
    %123 = arith.cmpi sge, %4, %122 : vector<1x128xi32>
    %cst_55 = arith.constant 0.000000e+00 : f32
    %124 = vector.shape_cast %123 : vector<1x128xi1> to vector<1x128xi1>
    %125 = vector.broadcast %124 : vector<1x128xi1> to vector<32x128xi1>
    %126 = vector.broadcast %cst_55 : f32 to vector<32x128xf32>
    %127 = arith.select %125, %119, %126 : vector<32x128xi1>, vector<32x128xf32>
    %128 = vector.extract_strided_slice %117 {offsets = [32, 0], sizes = [32, 128], strides = [1, 1]} : vector<96x128xf32> to vector<32x128xf32>
    %129 = arith.addf %127, %128 : vector<32x128xf32>
    %c124_i32_56 = arith.constant 124 : i32
    %130 = vector.broadcast %c124_i32_56 : i32 to vector<1x128xi32>
    %131 = arith.cmpi slt, %4, %130 : vector<1x128xi32>
    %cst_57 = arith.constant 0.000000e+00 : f32
    %132 = vector.shape_cast %131 : vector<1x128xi1> to vector<1x128xi1>
    %133 = vector.broadcast %132 : vector<1x128xi1> to vector<32x128xi1>
    %134 = vector.broadcast %cst_57 : f32 to vector<32x128xf32>
    %135 = arith.select %133, %121, %134 : vector<32x128xi1>, vector<32x128xf32>
    %136 = arith.addf %129, %135 : vector<32x128xf32>
    %c2_58 = arith.constant 2 : index
    %c0_59 = arith.constant 0 : index
    %c0_60 = arith.constant 0 : index
    %137 = vector.load %arg6[%c2_58, %c0_59, %c0_60] : memref<3x32x1xf32, #tpu.memory_space<vmem>>, vector<1x32x1xf32>
    %138 = vector.shape_cast %137 : vector<1x32x1xf32> to vector<32x1xf32>
    %139 = vector.broadcast %138 : vector<32x1xf32> to vector<32x128xf32>
    %140 = arith.addf %136, %139 : vector<32x128xf32>
    %cst_61 = arith.constant 0.000000e+00 : f32
    %141 = vector.broadcast %cst_61 : f32 to vector<32x128xf32>
    %142 = arith.maximumf %140, %141 : vector<32x128xf32>
    %c2_62 = arith.constant 2 : index
    %c0_63 = arith.constant 0 : index
    %c0_64 = arith.constant 0 : index
    %143 = vector.load %arg7[%c2_62, %c0_63, %c0_64] : memref<3x32x32xf32, #tpu.memory_space<vmem>>, vector<1x32x32xf32>
    %144 = vector.shape_cast %143 : vector<1x32x32xf32> to vector<32x32xf32>
    %cst_65 = arith.constant dense<0.000000e+00> : vector<32x128xf32>
    %145 = tpu.matmul %144, %142, %cst_65 {dimension_numbers = #tpu.dot_dimension_numbers<[1], [0], [0], [1], [0, 0, 1, 1], [], []>} : vector<32x32xf32>, vector<32x128xf32>, vector<32x128xf32> -> vector<32x128xf32>
    %c2_66 = arith.constant 2 : index
    %c0_67 = arith.constant 0 : index
    %c0_68 = arith.constant 0 : index
    %146 = vector.load %arg8[%c2_66, %c0_67, %c0_68] : memref<3x32x1xf32, #tpu.memory_space<vmem>>, vector<1x32x1xf32>
    %147 = vector.shape_cast %146 : vector<1x32x1xf32> to vector<32x1xf32>
    %148 = vector.broadcast %147 : vector<32x1xf32> to vector<32x128xf32>
    %149 = arith.addf %145, %148 : vector<32x128xf32>
    %150 = arith.addf %114, %149 : vector<32x128xf32>
    %151 = vector.broadcast %3 : vector<1x128xf32> to vector<32x128xf32>
    %152 = arith.mulf %150, %151 : vector<32x128xf32>
    %c0_69 = arith.constant 0 : index
    %c0_70 = arith.constant 0 : index
    %153 = vector.load %arg9[%c0_69, %c0_70] : memref<16x32xf32, #tpu.memory_space<vmem>>, vector<16x32xf32>
    %cst_71 = arith.constant dense<0.000000e+00> : vector<16x128xf32>
    %154 = tpu.matmul %153, %152, %cst_71 {dimension_numbers = #tpu.dot_dimension_numbers<[1], [0], [0], [1], [0, 0, 1, 1], [], []>} : vector<16x32xf32>, vector<32x128xf32>, vector<16x128xf32> -> vector<16x128xf32>
    %c0_72 = arith.constant 0 : index
    %c0_73 = arith.constant 0 : index
    %155 = vector.load %arg10[%c0_72, %c0_73] : memref<16x1xf32, #tpu.memory_space<vmem>>, vector<16x1xf32>
    %156 = vector.broadcast %155 : vector<16x1xf32> to vector<16x128xf32>
    %157 = arith.addf %154, %156 : vector<16x128xf32>
    %158 = vector.broadcast %3 : vector<1x128xf32> to vector<16x128xf32>
    %159 = arith.mulf %157, %158 : vector<16x128xf32>
    %c0_74 = arith.constant 0 : index
    %c0_75 = arith.constant 0 : index
    %c0_76 = arith.constant 0 : index
    %160 = vector.load %arg11[%c0_74, %c0_75, %c0_76] : memref<1x16x128xf32, #tpu.memory_space<vmem>>, vector<1x16x128xf32>
    %161 = vector.shape_cast %160 : vector<1x16x128xf32> to vector<16x128xf32>
    %162 = vector.shape_cast %159 : vector<16x128xf32> to vector<1x16x128xf32>
    tpu.vector_store %arg11[%c0_74, %c0_75, %c0_76], %162 {strides = array<i32>} : memref<1x16x128xf32, #tpu.memory_space<vmem>>, vector<1x16x128xf32>,
    return
  }
  func.func @transform_0(%arg0: i32) -> (i32, i32, i32) {
    %c0_i32 = arith.constant 0 : i32
    %c0_i32_0 = arith.constant 0 : i32
    %c0_i32_1 = arith.constant 0 : i32
    return %arg0, %c0_i32, %c0_i32_0 : i32, i32, i32
  }
  func.func @transform_1(%arg0: i32) -> (i32, i32, i32) {
    %c0_i32 = arith.constant 0 : i32
    %c0_i32_0 = arith.constant 0 : i32
    %c0_i32_1 = arith.constant 0 : i32
    return %arg0, %c0_i32, %c0_i32_0 : i32, i32, i32
  }
  func.func @transform_2(%arg0: i32) -> (i32, i32) {
    %c0_i32 = arith.constant 0 : i32
    %c0_i32_0 = arith.constant 0 : i32
    %c0_i32_1 = arith.constant 0 : i32
    return %c0_i32, %c0_i32_0 : i32, i32
  }
  func.func @transform_3(%arg0: i32) -> (i32, i32) {
    %c0_i32 = arith.constant 0 : i32
    %c0_i32_0 = arith.constant 0 : i32
    %c0_i32_1 = arith.constant 0 : i32
    return %c0_i32, %c0_i32_0 : i32, i32
  }
  func.func @transform_4(%arg0: i32) -> (i32, i32, i32) {
    %c0_i32 = arith.constant 0 : i32
    %c0_i32_0 = arith.constant 0 : i32
    %c0_i32_1 = arith.constant 0 : i32
    %c0_i32_2 = arith.constant 0 : i32
    return %c0_i32, %c0_i32_0, %c0_i32_1 : i32, i32, i32
  }
  func.func @transform_5(%arg0: i32) -> (i32, i32, i32) {
    %c0_i32 = arith.constant 0 : i32
    %c0_i32_0 = arith.constant 0 : i32
    %c0_i32_1 = arith.constant 0 : i32
    %c0_i32_2 = arith.constant 0 : i32
    return %c0_i32, %c0_i32_0, %c0_i32_1 : i32, i32, i32
  }
  func.func @transform_6(%arg0: i32) -> (i32, i32, i32) {
    %c0_i32 = arith.constant 0 : i32
    %c0_i32_0 = arith.constant 0 : i32
    %c0_i32_1 = arith.constant 0 : i32
    %c0_i32_2 = arith.constant 0 : i32
    return %c0_i32, %c0_i32_0, %c0_i32_1 : i32, i32, i32
  }
  func.func @transform_7(%arg0: i32) -> (i32, i32, i32) {
    %c0_i32 = arith.constant 0 : i32
    %c0_i32_0 = arith.constant 0 : i32
    %c0_i32_1 = arith.constant 0 : i32
    %c0_i32_2 = arith.constant 0 : i32
    return %c0_i32, %c0_i32_0, %c0_i32_1 : i32, i32, i32
  }
  func.func @transform_8(%arg0: i32) -> (i32, i32) {
    %c0_i32 = arith.constant 0 : i32
    %c0_i32_0 = arith.constant 0 : i32
    %c0_i32_1 = arith.constant 0 : i32
    return %c0_i32, %c0_i32_0 : i32, i32
  }
  func.func @transform_9(%arg0: i32) -> (i32, i32) {
    %c0_i32 = arith.constant 0 : i32
    %c0_i32_0 = arith.constant 0 : i32
    %c0_i32_1 = arith.constant 0 : i32
    return %c0_i32, %c0_i32_0 : i32, i32
  }
  func.func @transform_10(%arg0: i32) -> (i32, i32, i32) {
    %c0_i32 = arith.constant 0 : i32
    %c0_i32_0 = arith.constant 0 : i32
    %c0_i32_1 = arith.constant 0 : i32
    return %arg0, %c0_i32, %c0_i32_0 : i32, i32, i32
  }
}

</mosaic_0001>

<bundles_post_ra>
// kernel: _lambda_.3
= control target key start
LH: loop header
LB: loop body
LE: loop exit
PB: predicated region body
PF: predicated region fallthrough
CT: control target
= control target key end

     0   :  { %s538_s12 = smov 0   ;;  %s540_s13 = smov 0   ;;  %s599_s0 = inlined_call_operand.vmem [shape: f32[2,4,128], index: 0, kind: input, shape index: {}]   ;;  %s600_s1 = inlined_call_operand.vmem [shape: f32[32,4], index: 1, kind: input, shape index: {}]   ;;  %s601_s2 = inlined_call_operand.vmem [shape: f32[32,1], index: 2, kind: input, shape index: {}]   ;;  %s602_s3 = inlined_call_operand.vmem [shape: f32[2,32,128], index: 3, kind: output, shape index: {}]  }
   0x1   :  { %s542_s14 = smov 0  }
   0x2 LB: > { %s32_s15 = sadd.s32 1, %s511_s13  ;;  %p451_p0 = scmp.ge.s32.totalorder %s515_s14, 1  ;;  %s515_s14 = sphi %s542_s14, %s13_s14   ;;  %s511_s13 = sphi %s540_s13, %s604_s13   ;;  %s507_s12 = sphi %s538_s12, %s603_s12  }
   0x3   : > { %p34_p1 = scmp.ge.s32.totalorder %s32_s15, 2  ;;  %p176_p2 = scmp.lt.s32.totalorder %s515_s14, 3 }
   0x5   : > { %s606_s15 = smov (%p34_p1, %s32_s15), 0  ;;  %p177_p3 = pnand %p451_p0, %p176_p2 }
   0x6   : > { %p212_p4 = scmp.lt.s32.totalorder (!%p177_p3), %s507_s12, 1 }
   0x7   : > { %180 = sbr.rel (%p177_p3) target bundleno = 155 (0x9b), region = 32 }
   0xc   : > { %v517_v0 = vmov 0   ;;  %v314_v1 = vld [vmem:[%s601_s2 + $0x10] sm:$0xff]  ;;  %s608_s12 = smov (!%p212_p4, %s507_s12), 1  ;;  %v312_v2 = vld [vmem:[%s601_s2] sm:$0xff]  ;;  %vm264_vm0 = vcmask 1043456   ;;  %vm251_vm1 = vcmask 31744  }
   0xd   : > { %492 = vset.pattern.permute.xlu1 %v517_v0  ;;  %491 = vset.pattern.permute.xlu0 %v517_v0  ;;  %s452_s20 = sshll.u32 %s608_s12, 2  ;;  %v246_v4 = vld [vmem:[%s600_s1] sm:$0xff]  ;;  %v247_v5 = vld [vmem:[%s600_s1 + $0x8] sm:$0xff]  ;;  %v248_v6 = vld [vmem:[%s600_s1 + $0x10] sm:$0xff]  ;;  %s462_s9 = sshll.u32 %s608_s12, 5 }
   0xe   : > { %328 = vperm.xlu1 %492, %v314_v1   ;;  %318 = vperm.xlu0 %491, %v312_v2   ;;  %s221_s23 = scalar_lea.vmem %s599_s0, %s452_s20  ;;  %v249_v7 = vld [vmem:[%s600_s1 + $0x18] sm:$0xff]  ;;  %v313_v9 = vld [vmem:[%s601_s2 + $0x8] sm:$0xff]  ;;  %s233_s16 = scalar_lea.vmem %s602_s3, %s462_s9 }
   0xf   : > { %v250_v3 = vld [vmem:[%s221_s23] sm:$0xf]  ;;  %v315_v8 = vld [vmem:[%s601_s2 + $0x18] sm:$0xff] }
  0x10   : > { %455 = vmatpush.msk.msra.mxu0 %vm264_vm0, %v250_v3  ;;  %463 = vmatpush.msk.msra.mxu1 %vm264_vm0, %v250_v3 }
  0x11   : > { %464 = vmatpush.msk.msra.mxu2 %vm264_vm0, %v250_v3  ;;  %465 = vmatpush.msk.msra.mxu3 %vm264_vm0, %v250_v3 }
  0x12   : > { %456 = vmatmul.msk.f32.vlgmr.msra.gmra.mxu0 %vm251_vm1, %v246_v4  ;;  %457 = vmatmul.msk.f32.vlgmr.msra.gmra.mxu1 %vm251_vm1, %v247_v5 }
  0x13   : > { %458 = vmatmul.msk.f32.vlgmr.msra.gmra.mxu2 %vm251_vm1, %v248_v6  ;;  %459 = vmatmul.msk.f32.vlgmr.msra.gmra.mxu3 %vm251_vm1, %v249_v7 }
  0x16   : > { %333 = vperm.xlu1 %492, %v315_v8   ;;  %323 = vperm.xlu0 %491, %v313_v9  }
  0x80   : > { %v319_v10 = vpop.permute.xlu0 %318  ;;  %v329_v11 = vpop.permute.xlu1 %328 }
  0x88   : > { %v324_v12 = vpop.permute.xlu0 %323  ;;  %v334_v17 = vpop.permute.xlu1 %333 }
  0x8f   : > { %v285_v13 = vpop.f32.mrf.mxu0  ;;  %v288_v14 = vpop.f32.mrf.mxu1 }
  0x90   : > { %v336_v15 = vadd.f32 %v319_v10, %v285_v13  ;;  %v337_v16 = vadd.f32 %v324_v12, %v288_v14 }
  0x92   : > { %340 = vst [vmem:[%s233_s16] sm:$0xff] %v336_v15 }
  0x93   : > { %341 = vst [vmem:[%s233_s16 + $0x8] sm:$0xff] %v337_v16 }
  0x96   : > { %v291_v18 = vpop.f32.mrf.mxu2  ;;  %v294_v19 = vpop.f32.mrf.mxu3 }
  0x97   : > { %v338_v20 = vadd.f32 %v329_v11, %v291_v18  ;;  %v339_v21 = vadd.f32 %v334_v17, %v294_v19 }
  0x99   : > { %342 = vst [vmem:[%s233_s16 + $0x10] sm:$0xff] %v338_v20 }
  0x9a   : > { %343 = vst [vmem:[%s233_s16 + $0x18] sm:$0xff] %v339_v21 }
  0x9b PF: > { %s13_s14 = sadd.s32 1, %s515_s14   ;;  %s603_s12 = smov %s511_s13 }
  0x9c   : > { %p10_p5 = scmp.ge.s32.totalorder %s13_s14, 4   ;;  %s604_s13 = smov %s606_s15 }
  0x9e   :  { %12 = sbr.rel (!%p10_p5) target bundleno = 2 (0x2), region = 73 }

// kernel: _lambda_.4
= control target key start
LH: loop header
LB: loop body
LE: loop exit
PB: predicated region body
PF: predicated region fallthrough
CT: control target
= control target key end

     0   :  { %s1399_s27 = smov 0   ;;  %s1816_s0 = inlined_call_operand.vmem [shape: f32[2,32,128], index: 0, kind: input, shape index: {}]   ;;  %s1817_s1 = inlined_call_operand.vmem [shape: f32[2,1,128], index: 1, kind: input, shape index: {}]   ;;  %s1818_s2 = inlined_call_operand.vmem [shape: f32[3,96,32], index: 2, kind: input, shape index: {}]   ;;  %s1819_s3 = inlined_call_operand.vmem [shape: f32[3,32,1], index: 3, kind: input, shape index: {}]   ;;  %s1820_s4 = inlined_call_operand.vmem [shape: f32[3,32,32], index: 4, kind: input, shape index: {}]   ;;  %s1821_s5 = inlined_call_operand.vmem [shape: f32[3,32,1], index: 5, kind: input, shape index: {}]   ;;  %s1822_s6 = inlined_call_operand.vmem [shape: f32[16,32], index: 6, kind: input, shape index: {}]   ;;  %s1823_s7 = inlined_call_operand.vmem [shape: f32[16,1], index: 7, kind: input, shape index: {}]   ;;  %s1824_s8 = inlined_call_operand.vmem [shape: f32[2,16,128], index: 8, kind: output, shape index: {}]  }
   0x1 LB: > { %s1201_s28 = sadd.s32 4294967295, %s1345_s27   ;;  %p1205_p0 = scmp.ge.s32.totalorder %s1345_s27, 1  ;;  %s1345_s27 = sphi %s1399_s27, %s18_s27  }
   0x2   : > { %p270_p1 = scmp.lt.s32.totalorder %s1345_s27, 3 }
   0x4   : > { %p271_p2 = pnand %p1205_p0, %p270_p1 }
   0x5   : > { %p307_p3 = scmp.lt.s32.totalorder (!%p271_p2), %s1201_s28, 1  ;;  %s1347_s19 = smov (!%p271_p2), 1  }
   0x6   : > { %274 = sbr.rel (%p271_p2) target bundleno = 1704 (0x6a8), region = 52  ;;  %s1349_s24 = smov (!%p271_p2), 127  }
   0x7   : > { %s1350_s14 = smov (!%p271_p2), 2   ;;  %s1351_s15 = smov (!%p271_p2), 126  }
   0x8   : > { %s1353_s25 = smov (!%p271_p2), 124  }
   0xb   : > { %v325_v0 = vlaneseq  ;;  %s1826_s28 = smov (!%p307_p3, %s1201_s28), 1  ;;  %v334_v10 = vld [vmem:[%s1818_s2] sm:$0xff]  ;;  %vm346_vm1 = vcmask 261120   ;;  %v335_v11 = vld [vmem:[%s1818_s2 + $0x8] sm:$0xff]  ;;  %v336_v12 = vld [vmem:[%s1818_s2 + $0x10] sm:$0xff]  ;;  %v1348_v26 = vmov 0  }
   0xc   : > { %s1314_s29 = sshll.u32 %s1826_s28, 5  ;;  %s314_s10 = scalar_lea.vmem %s1817_s1, %s1826_s28  ;;  %v337_v13 = vld [vmem:[%s1818_s2 + $0x18] sm:$0xff]  ;;  %v338_v14 = vld [vmem:[%s1818_s2 + $0x20] sm:$0xff]  ;;  %v339_v15 = vld [vmem:[%s1818_s2 + $0x28] sm:$0xff]  ;;  %1335 = vset.pattern.permute.xlu2 %v1348_v26  ;;  %1336 = vset.pattern.permute.xlu1 %v1348_v26 }
   0xd   : > { %v1409_v1 = vand.u32 127, %v325_v0  ;;  %s311_s13 = scalar_lea.vmem %s1816_s0, %s1314_s29  ;;  %v340_v16 = vld [vmem:[%s1818_s2 + $0x30] sm:$0xff]  ;;  %v341_v17 = vld [vmem:[%s1818_s2 + $0x38] sm:$0xff]  ;;  %v342_v18 = vld [vmem:[%s1818_s2 + $0x40] sm:$0xff]  ;;  %1337 = vset.pattern.permute.xlu0 %v1348_v26  ;;  %s1315_s16 = sshll.u32 %s1826_s28, 4 }
   0xe   : > { %v323_v2 = vld [vmem:[%s311_s13 + $0x18] sm:$0xff]  ;;  %v322_v3 = vld [vmem:[%s311_s13 + $0x10] sm:$0xff]  ;;  %v321_v4 = vld [vmem:[%s311_s13 + $0x8] sm:$0xff] }
   0xf   : > { %vm327_vm0 = vcmp.lt.s32.totalorder %v1409_v1, 100  ;;  %v320_v8 = vld [vmem:[%s311_s13] sm:$0xff]  ;;  %v343_v19 = vld [vmem:[%s1818_s2 + $0x48] sm:$0xff]  ;;  %v344_v20 = vld [vmem:[%s1818_s2 + $0x50] sm:$0xff]  ;;  %vm452_vm2 = vcmp.ge.s32.totalorder %v1409_v1, 1  ;;  %vm463_vm3 = vcmp.lt.s32.totalorder %v1409_v1, 127 }
  0x10   : > { %v1420_v5 = vsel %vm327_vm0, %v323_v2, 0.0  ;;  %1210 = vmatpush.msk.msra.mxu0 %vm327_vm0, %v323_v2  ;;  %v1422_v6 = vsel %vm327_vm0, %v322_v3, 0.0  ;;  %v1424_v7 = vsel %vm327_vm0, %v321_v4, 0.0  ;;  %v1426_v9 = vsel %vm327_vm0, %v320_v8, 0.0  ;;  %v345_v21 = vld [vmem:[%s1818_s2 + $0x58] sm:$0xff]  ;;  %v476_v30 = vld [vmem:[%s1819_s3 + $0x10] sm:$0xff] }
  0x11   : > { %v477_v28 = vld [vmem:[%s1819_s3 + $0x18] sm:$0xff]  ;;  %v474_v36 = vld [vmem:[%s1819_s3] sm:$0xff]  ;;  %v475_v38 = vld [vmem:[%s1819_s3 + $0x8] sm:$0xff]  ;;  %vm704_vm4 = vcmp.ge.s32.totalorder %v1409_v1, 2  ;;  %vm715_vm5 = vcmp.lt.s32.totalorder %v1409_v1, 126  ;;  %vm956_vm6 = vcmp.ge.s32.totalorder %v1409_v1, 4 }
  0x12   : > { %1211 = vmatpush.msk.msra.mxu0 %vm327_vm0, %v322_v3  ;;  %495 = vperm.xlu2 %1335, %v477_v28   ;;  %v511_v39 = vld [vmem:[%s1821_s5 + $0x8] sm:$0xff]  ;;  %v512_v40 = vld [vmem:[%s1821_s5 + $0x10] sm:$0xff]  ;;  %v510_v41 = vld [vmem:[%s1821_s5] sm:$0xff]  ;;  %vm967_vm7 = vcmp.lt.s32.totalorder %v1409_v1, 124 }
  0x13   : > { %v1257_v42 = vld [vmem:[%s1819_s3 + $0x38] sm:$0xff]  ;;  %v1299_v1 = vld [vmem:[%s1820_s4 + $0x48] sm:$0xff] }
  0x14   : > { %1212 = vmatpush.msk.msra.mxu0 %vm327_vm0, %v321_v4  ;;  %v513_v60 = vld [vmem:[%s1821_s5 + $0x18] sm:$0xff] }
  0x16   : > { %1213 = vmatpush.msk.msra.mxu0 %vm327_vm0, %v320_v8 }
  0x17   : > { %1214 = vmatmul.msk.f32.vlgmr.msra.gmra.mxu0 %vm346_vm1, %v334_v10 }
  0x1a   : > { %490 = vperm.xlu2 %1335, %v476_v30  }
  0x1f   : > { %1215 = vmatmul.msk.f32.gmra.mxu0 %vm346_vm1, %v335_v11 }
  0x27   : > { %1216 = vmatmul.msk.f32.gmra.mxu0 %vm346_vm1, %v336_v12 }
  0x2f   : > { %1217 = vmatmul.msk.f32.gmra.mxu0 %vm346_vm1, %v337_v13 }
  0x37   : > { %1218 = vmatmul.msk.f32.gmra.mxu0 %vm346_vm1, %v338_v14 }
  0x3f   : > { %1219 = vmatmul.msk.f32.gmra.mxu0 %vm346_vm1, %v339_v15 }
  0x47   : > { %1220 = vmatmul.msk.f32.gmra.mxu0 %vm346_vm1, %v340_v16 }
  0x4f   : > { %1221 = vmatmul.msk.f32.gmra.mxu0 %vm346_vm1, %v341_v17 }
  0x57   : > { %1222 = vmatmul.msk.f32.gmra.mxu0 %vm346_vm1, %v342_v18 }
  0x5f   : > { %1223 = vmatmul.msk.f32.gmra.mxu0 %vm346_vm1, %v343_v19 }
  0x67   : > { %1224 = vmatmul.msk.f32.gmra.mxu0 %vm346_vm1, %v344_v20 }
  0x6c   : > { %v496_v44 = vpop.permute.xlu2 %495 }
  0x6f   : > { %1225 = vmatmul.msk.f32.gmra.mxu0 %vm346_vm1, %v345_v21  ;;  %v506_v21 = vld [vmem:[%s1820_s4] sm:$0xff] }
  0x74   : > { %v491_v47 = vpop.permute.xlu2 %490 }
  0x94   : > { %v400_v22 = vpop.f32.mrf.mxu0 }
  0x95   : > { %436 = vrot.lane.b32.xlu0 %v400_v22, %s1347_s19  ;;  %v507_v22 = vld [vmem:[%s1820_s4 + $0x8] sm:$0xff] }
  0x9c   : > { %v403_v23 = vpop.f32.mrf.mxu0 }
  0x9d   : > { %438 = vrot.lane.b32.xlu1 %v403_v23, %s1347_s19  ;;  %v508_v23 = vld [vmem:[%s1820_s4 + $0x10] sm:$0xff] }
  0xa4   : > { %v406_v24 = vpop.f32.mrf.mxu0 }
  0xa5   : > { %440 = vrot.lane.b32.xlu0 %v406_v24, %s1347_s19  ;;  %v509_v24 = vld [vmem:[%s1820_s4 + $0x18] sm:$0xff] }
  0xac   : > { %v409_v25 = vpop.f32.mrf.mxu0 }
  0xad   : > { %442 = vrot.lane.b32.xlu0 %v409_v25, %s1347_s19  ;;  %s319_s19 = scalar_lea.vmem %s1824_s8, %s1315_s16 }
  0xb4   : > { %v412_v27 = vpop.f32.mrf.mxu0 }
  0xbc   : > { %v415_v29 = vpop.f32.mrf.mxu0 }
  0xc4   : > { %v418_v31 = vpop.f32.mrf.mxu0 }
  0xcc   : > { %v421_v32 = vpop.f32.mrf.mxu0 }
  0xd4   : > { %v424_v33 = vpop.f32.mrf.mxu0 }
  0xd5   : > { %444 = vrot.lane.b32.xlu0 %v424_v33, %s1349_s24 }
  0xdc   : > { %v427_v34 = vpop.f32.mrf.mxu0 }
  0xdd   : > { %446 = vrot.lane.b32.xlu1 %v427_v34, %s1349_s24  ;;  %531 = vperm.xlu0 %1337, %v513_v60  }
  0xe4   : > { %v430_v35 = vpop.f32.mrf.mxu0 }
  0xe5   : > { %448 = vrot.lane.b32.xlu2 %v430_v35, %s1349_s24 }
  0xec   : > { %v433_v37 = vpop.f32.mrf.mxu0 }
  0xed   : > { %450 = vrot.lane.b32.xlu1 %v433_v37, %s1349_s24  ;;  %480 = vperm.xlu2 %1335, %v474_v36   ;;  %v1534_v36 = vld [vmem:[%s314_s10] ss:$0 sm:$0xff]  ;;  %s1352_s24 = smov 4  }
  0xf5   : > { %485 = vperm.xlu1 %1336, %v475_v38   ;;  %521 = vperm.xlu2 %1335, %v511_v39  }
  0xfd   : > { %526 = vperm.xlu1 %1336, %v512_v40  }
 0x105   : > { %516 = vperm.xlu1 %1336, %v510_v41  }
 0x107   : > { %v437_v43 = vpop.permute.xlu0 %436 }
 0x108   : > { %v455_v56 = vsel %vm452_vm2, %v437_v43, 0.0 }
 0x109   : > { %v459_v2 = vadd.f32 %v455_v56, %v412_v27 }
 0x10d   : > { %748 = vperm.xlu1 %1336, %v1257_v42  }
 0x10f   : > { %v439_v46 = vpop.permute.xlu1 %438 }
 0x110   : > { %v456_v62 = vsel %vm452_vm2, %v439_v46, 0.0  ;;  %v1234_v46 = vld [vmem:[%s1818_s2 + $0x80] sm:$0xff] }
 0x111   : > { %v460_v10 = vadd.f32 %v456_v62, %v415_v29 }
 0x117   : > { %v441_v45 = vpop.permute.xlu0 %440 }
 0x118   : > { %v457_v51 = vsel %vm452_vm2, %v441_v45, 0.0  ;;  %v1233_v45 = vld [vmem:[%s1818_s2 + $0x78] sm:$0xff] }
 0x119   : > { %v461_v54 = vadd.f32 %v457_v51, %v418_v31  ;;  %v1239_v51 = vld [vmem:[%s1818_s2 + $0xa8] sm:$0xff] }
 0x11f   : > { %v443_v48 = vpop.permute.xlu0 %442 }
 0x120   : > { %v458_v52 = vsel %vm452_vm2, %v443_v48, 0.0  ;;  %v1236_v48 = vld [vmem:[%s1818_s2 + $0x90] sm:$0xff] }
 0x121   : > { %v462_v57 = vadd.f32 %v458_v52, %v421_v32  ;;  %v1240_v52 = vld [vmem:[%s1818_s2 + $0xb0] sm:$0xff] }
 0x13f   : > { %v449_v50 = vpop.permute.xlu2 %448 }
 0x140   : > { %v468_v53 = vsel %vm463_vm3, %v449_v50, 0.0  ;;  %v1238_v50 = vld [vmem:[%s1818_s2 + $0xa0] sm:$0xff] }
 0x141   : > { %v472_v58 = vadd.f32 %v468_v53, %v461_v54  ;;  %v1241_v53 = vld [vmem:[%s1818_s2 + $0xb8] sm:$0xff] }
 0x143   : > { %v500_v8 = vadd.f32 %v491_v47, %v472_v58  ;;  %v1235_v47 = vld [vmem:[%s1818_s2 + $0x88] sm:$0xff] }
 0x145   : > { %v504_v16 = vmax.f32 %v500_v8, 0.0  ;;  %v1255_v8 = vld [vmem:[%s1819_s3 + $0x28] sm:$0xff] }
 0x147   : > { %v445_v55 = vpop.permute.xlu0 %444  ;;  %v481_v12 = vpop.permute.xlu2 %480 }
 0x148   : > { %v466_v63 = vsel %vm463_vm3, %v445_v55, 0.0 }
 0x149   : > { %v470_v11 = vadd.f32 %v466_v63, %v459_v2  ;;  %v1265_v63 = vld [vmem:[%s1821_s5 + $0x38] sm:$0xff]  ;;  %v1262_v2 = vld [vmem:[%s1821_s5 + $0x20] sm:$0xff] }
 0x14b   : > { %v498_v17 = vadd.f32 %v481_v12, %v470_v11  ;;  %v1264_v11 = vld [vmem:[%s1821_s5 + $0x30] sm:$0xff] }
 0x14c   : > { %v1256_v12 = vld [vmem:[%s1819_s3 + $0x30] sm:$0xff] }
 0x14d   : > { %v502_v20 = vmax.f32 %v498_v17, 0.0 }
 0x14f   : > { %v447_v49 = vpop.permute.xlu1 %446  ;;  %v532_v28 = vpop.permute.xlu0 %531 }
 0x150   : > { %v467_v3 = vsel %vm463_vm3, %v447_v49, 0.0  ;;  %v522_v29 = vpop.permute.xlu2 %521  ;;  %v1237_v49 = vld [vmem:[%s1818_s2 + $0x98] sm:$0xff] }
 0x151   : > { %v471_v14 = vadd.f32 %v467_v3, %v460_v10 }
 0x15f   : > { %v451_v59 = vpop.permute.xlu1 %450 }
 0x160   : > { %v469_v61 = vsel %vm463_vm3, %v451_v59, 0.0 }
 0x161   : > { %v473_v0 = vadd.f32 %v469_v61, %v462_v57 }
 0x163   : > { %v501_v4 = vadd.f32 %v496_v44, %v473_v0 }
 0x165   : > { %v505_v13 = vmax.f32 %v501_v4, 0.0  ;;  %v1297_v4 = vld [vmem:[%s1819_s3 + $0x58] sm:$0xff] }
 0x167   : > { %558 = vmatpush.msra.mxu1 %v505_v13  ;;  %1316 = vmatpush.msra.mxu3 %v505_v13  ;;  %v486_v15 = vpop.permute.xlu1 %485  ;;  %v1254_v13 = vld [vmem:[%s1819_s3 + $0x20] sm:$0xff] }
 0x168   : > { %v499_v18 = vadd.f32 %v486_v15, %v471_v14  ;;  %v1263_v14 = vld [vmem:[%s1821_s5 + $0x28] sm:$0xff] }
 0x169   : > { %559 = vmatpush.msra.mxu1 %v504_v16  ;;  %1317 = vmatpush.msra.mxu3 %v504_v16 }
 0x16a   : > { %v503_v19 = vmax.f32 %v499_v18, 0.0 }
 0x16c   : > { %560 = vmatpush.msra.mxu1 %v503_v19  ;;  %1318 = vmatpush.msra.mxu3 %v503_v19 }
 0x16e   : > { %561 = vmatpush.msra.mxu1 %v502_v20  ;;  %1319 = vmatpush.msra.mxu3 %v502_v20 }
 0x16f   : > { %1226 = vmatmul.msk.f32.vlgmr.msra.gmra.mxu1 %vm346_vm1, %v506_v21  ;;  %1227 = vmatmul.msk.f32.vlgmr.msra.gmra.mxu3 %vm346_vm1, %v507_v22  ;;  %v527_v26 = vpop.permute.xlu1 %526 }
 0x177   : > { %1228 = vmatmul.msk.f32.gmra.mxu3 %vm346_vm1, %v508_v23  ;;  %v517_v35 = vpop.permute.xlu1 %516 }
 0x17f   : > { %1229 = vmatmul.msk.f32.gmra.mxu3 %vm346_vm1, %v509_v24  ;;  %v749_v19 = vpop.permute.xlu1 %748 }
 0x1ec   : > { %v563_v31 = vpop.f32.mrf.mxu1 }
 0x1ed   : > { %v564_v37 = vadd.f32 %v563_v31, %v517_v35 }
 0x1ef   : > { %v575_v42 = vadd.f32 %v564_v37, %v1426_v9  ;;  %v1232_v9 = vld [vmem:[%s1818_s2 + $0x70] sm:$0xff] }
 0x1f2   : > { %v566_v25 = vpop.f32.mrf.mxu3 }
 0x1f3   : > { %v567_v33 = vadd.f32 %v566_v25, %v522_v29 }
 0x1f5   : > { %v576_v40 = vadd.f32 %v567_v33, %v1424_v7  ;;  %v1231_v7 = vld [vmem:[%s1818_s2 + $0x68] sm:$0xff] }
 0x1f7   : > { %v1549_v44 = vmul.f32 %v1534_v36, %v576_v40 }
 0x1fa   : > { %v569_v27 = vpop.f32.mrf.mxu3 }
 0x1fb   : > { %v570_v30 = vadd.f32 %v569_v27, %v527_v26 }
 0x1fd   : > { %v577_v38 = vadd.f32 %v570_v30, %v1422_v6  ;;  %v1230_v6 = vld [vmem:[%s1818_s2 + $0x60] sm:$0xff] }
 0x1ff   : > { %v1545_v43 = vmul.f32 %v1534_v36, %v577_v38 }
 0x202   : > { %v572_v32 = vpop.f32.mrf.mxu3 }
 0x203   : > { %v573_v34 = vadd.f32 %v572_v32, %v532_v28 }
 0x205   : > { %v578_v39 = vadd.f32 %v573_v34, %v1420_v5  ;;  %v1553_v5 = vmul.f32 %v1534_v36, %v575_v42 }
 0x207   : > { %v1540_v41 = vmul.f32 %v1534_v36, %v578_v39 }
 0x209   : > { %647 = vmatpush.msra.mxu2 %v1540_v41 }
 0x20b   : > { %648 = vmatpush.msra.mxu2 %v1545_v43 }
 0x20d   : > { %649 = vmatpush.msra.mxu2 %v1549_v44 }
 0x20f   : > { %650 = vmatpush.msra.mxu2 %v1553_v5 }
 0x210   : > { %1242 = vmatmul.msk.f32.vlgmr.msra.gmra.mxu2 %vm346_vm1, %v1230_v6 }
 0x218   : > { %1243 = vmatmul.msk.f32.gmra.mxu2 %vm346_vm1, %v1231_v7 }
 0x220   : > { %1244 = vmatmul.msk.f32.gmra.mxu2 %vm346_vm1, %v1232_v9 }
 0x228   : > { %1245 = vmatmul.msk.f32.gmra.mxu2 %vm346_vm1, %v1233_v45 }
 0x230   : > { %1246 = vmatmul.msk.f32.gmra.mxu2 %vm346_vm1, %v1234_v46 }
 0x238   : > { %1247 = vmatmul.msk.f32.gmra.mxu2 %vm346_vm1, %v1235_v47 }
 0x240   : > { %1248 = vmatmul.msk.f32.gmra.mxu2 %vm346_vm1, %v1236_v48 }
 0x248   : > { %1249 = vmatmul.msk.f32.gmra.mxu2 %vm346_vm1, %v1237_v49 }
 0x250   : > { %1250 = vmatmul.msk.f32.gmra.mxu2 %vm346_vm1, %v1238_v50 }
 0x258   : > { %1251 = vmatmul.msk.f32.gmra.mxu2 %vm346_vm1, %v1239_v51 }
 0x260   : > { %1252 = vmatmul.msk.f32.gmra.mxu2 %vm346_vm1, %v1240_v52  ;;  %v1258_v52 = vld [vmem:[%s1820_s4 + $0x20] sm:$0xff] }
 0x268   : > { %1253 = vmatmul.msk.f32.gmra.mxu2 %vm346_vm1, %v1241_v53  ;;  %v1259_v53 = vld [vmem:[%s1820_s4 + $0x28] sm:$0xff] }
 0x293   : > { %v652_v54 = vpop.f32.mrf.mxu2 }
 0x294   : > { %688 = vrot.lane.b32.xlu2 %v652_v54, %s1350_s14  ;;  %v1260_v54 = vld [vmem:[%s1820_s4 + $0x30] sm:$0xff] }
 0x29b   : > { %v655_v55 = vpop.f32.mrf.mxu2 }
 0x29c   : > { %690 = vrot.lane.b32.xlu2 %v655_v55, %s1350_s14  ;;  %v1261_v55 = vld [vmem:[%s1820_s4 + $0x38] sm:$0xff] }
 0x2a3   : > { %v658_v56 = vpop.f32.mrf.mxu2 }
 0x2a4   : > { %692 = vrot.lane.b32.xlu0 %v658_v56, %s1350_s14 }
 0x2ab   : > { %v661_v57 = vpop.f32.mrf.mxu2 }
 0x2ac   : > { %694 = vrot.lane.b32.xlu2 %v661_v57, %s1350_s14 }
 0x2b3   : > { %v664_v58 = vpop.f32.mrf.mxu2 }
 0x2bb   : > { %v667_v59 = vpop.f32.mrf.mxu2 }
 0x2c3   : > { %v670_v60 = vpop.f32.mrf.mxu2 }
 0x2cb   : > { %v673_v61 = vpop.f32.mrf.mxu2 }
 0x2d3   : > { %v676_v62 = vpop.f32.mrf.mxu2 }
 0x2d4   : > { %696 = vrot.lane.b32.xlu2 %v676_v62, %s1351_s15 }
 0x2db   : > { %v679_v0 = vpop.f32.mrf.mxu2 }
 0x2dc   : > { %786 = vperm.xlu2 %1335, %v1265_v63   ;;  %698 = vrot.lane.b32.xlu0 %v679_v0, %s1351_s15 }
 0x2e3   : > { %v682_v3 = vpop.f32.mrf.mxu2 }
 0x2e4   : > { %771 = vperm.xlu2 %1335, %v1262_v2   ;;  %700 = vrot.lane.b32.xlu0 %v682_v3, %s1351_s15 }
 0x2eb   : > { %v685_v10 = vpop.f32.mrf.mxu2 }
 0x2ec   : > { %1000 = vperm.xlu2 %1335, %v1297_v4   ;;  %738 = vperm.xlu0 %1337, %v1255_v8  }
 0x2ed   : > { %702 = vrot.lane.b32.xlu1 %v685_v10, %s1351_s15 }
 0x2ee   : > { %v689_v15 = vpop.permute.xlu2 %688 }
 0x2ef   : > { %v707_v7 = vsel %vm704_vm4, %v689_v15, 0.0 }
 0x2f0   : > { %v711_v46 = vadd.f32 %v707_v7, %v664_v58  ;;  %v1092_v7 = vld [vmem:[%s1823_s7] sm:$0xff] }
 0x2f4   : > { %781 = vperm.xlu0 %1337, %v1264_v11  }
 0x2f5   : > { %743 = vperm.xlu1 %1336, %v1256_v12  }
 0x2f6   : > { %v691_v17 = vpop.permute.xlu2 %690 }
 0x2f7   : > { %v708_v26 = vsel %vm704_vm4, %v691_v17, 0.0  ;;  %v1274_v17 = vld [vmem:[%s1818_s2 + $0xe0] sm:$0xff] }
 0x2f8   : > { %v712_v32 = vadd.f32 %v708_v26, %v667_v59 }
 0x2fd   : > { %733 = vperm.xlu1 %1336, %v1254_v13  }
 0x305   : > { %776 = vperm.xlu1 %1336, %v1263_v14  }
 0x306   : > { %v695_v20 = vpop.permute.xlu2 %694 }
 0x307   : > { %v710_v22 = vsel %vm704_vm4, %v695_v20, 0.0  ;;  %v1277_v20 = vld [vmem:[%s1818_s2 + $0xf8] sm:$0xff] }
 0x308   : > { %v714_v23 = vadd.f32 %v710_v22, %v673_v61  ;;  %v1279_v22 = vld [vmem:[%s1818_s2 + $0x108] sm:$0xff] }
 0x316   : > { %v693_v16 = vpop.permute.xlu0 %692 }
 0x317   : > { %v709_v27 = vsel %vm704_vm4, %v693_v16, 0.0  ;;  %v1273_v16 = vld [vmem:[%s1818_s2 + $0xd8] sm:$0xff] }
 0x318   : > { %v713_v33 = vadd.f32 %v709_v27, %v670_v60 }
 0x32e   : > { %v697_v40 = vpop.permute.xlu2 %696 }
 0x32f   : > { %v718_v45 = vsel %vm715_vm5, %v697_v40, 0.0 }
 0x330   : > { %v722_v48 = vadd.f32 %v718_v45, %v711_v46  ;;  %v1303_v45 = vld [vmem:[%s1821_s5 + $0x48] sm:$0xff] }
 0x331   : > { %v1093_v46 = vld [vmem:[%s1823_s7 + $0x8] sm:$0xff] }
 0x336   : > { %v787_v58 = vpop.permute.xlu2 %786 }
 0x33e   : > { %v772_v3 = vpop.permute.xlu2 %771 }
 0x34e   : > { %v699_v18 = vpop.permute.xlu0 %698 }
 0x34f   : > { %v719_v29 = vsel %vm715_vm5, %v699_v18, 0.0  ;;  %v1275_v18 = vld [vmem:[%s1818_s2 + $0xe8] sm:$0xff] }
 0x350   : > { %v723_v37 = vadd.f32 %v719_v29, %v712_v32 }
 0x356   : > { %v701_v21 = vpop.permute.xlu0 %700 }
 0x357   : > { %v720_v30 = vsel %vm715_vm5, %v701_v21, 0.0  ;;  %v1278_v21 = vld [vmem:[%s1818_s2 + $0x100] sm:$0xff] }
 0x358   : > { %v724_v38 = vadd.f32 %v720_v30, %v713_v33 }
 0x35e   : > { %v739_v34 = vpop.permute.xlu0 %738 }
 0x35f   : > { %v703_v24 = vpop.permute.xlu1 %702  ;;  %v752_v42 = vadd.f32 %v739_v34, %v723_v37  ;;  %v1305_v34 = vld [vmem:[%s1821_s5 + $0x58] sm:$0xff]  ;;  %v1302_v37 = vld [vmem:[%s1821_s5 + $0x40] sm:$0xff] }
 0x360   : > { %v721_v25 = vsel %vm715_vm5, %v703_v24, 0.0  ;;  %v1281_v24 = vld [vmem:[%s1818_s2 + $0x118] sm:$0xff] }
 0x361   : > { %v725_v28 = vadd.f32 %v721_v25, %v714_v23  ;;  %v756_v47 = vmax.f32 %v752_v42, 0.0  ;;  %v1280_v23 = vld [vmem:[%s1818_s2 + $0x110] sm:$0xff] }
 0x362   : > { %v1304_v42 = vld [vmem:[%s1821_s5 + $0x50] sm:$0xff] }
 0x363   : > { %v754_v31 = vadd.f32 %v749_v19, %v725_v28  ;;  %v1276_v19 = vld [vmem:[%s1818_s2 + $0xf0] sm:$0xff] }
 0x365   : > { %v758_v35 = vmax.f32 %v754_v31, 0.0 }
 0x366   : > { %v782_v60 = vpop.permute.xlu0 %781 }
 0x367   : > { %813 = vmatpush.msrb.mxu3 %v758_v35  ;;  %v744_v39 = vpop.permute.xlu1 %743 }
 0x368   : > { %v753_v6 = vadd.f32 %v744_v39, %v724_v38  ;;  %v1295_v39 = vld [vmem:[%s1819_s3 + $0x48] sm:$0xff] }
 0x36a   : > { %v757_v9 = vmax.f32 %v753_v6, 0.0  ;;  %v1296_v6 = vld [vmem:[%s1819_s3 + $0x50] sm:$0xff] }
 0x36c   : > { %814 = vmatpush.msrb.mxu3 %v757_v9  ;;  %v1294_v9 = vld [vmem:[%s1819_s3 + $0x40] sm:$0xff] }
 0x36e   : > { %815 = vmatpush.msrb.mxu3 %v756_v47 }
 0x36f   : > { %v734_v49 = vpop.permute.xlu1 %733 }
 0x370   : > { %v751_v50 = vadd.f32 %v734_v49, %v722_v48  ;;  %v1001_v49 = vpop.permute.xlu2 %1000 }
 0x372   : > { %v755_v51 = vmax.f32 %v751_v50, 0.0 }
 0x374   : > { %816 = vmatpush.msrb.mxu3 %v755_v51 }
 0x375   : > { %1266 = vmatmul.msk.f32.vlgmr.msrb.gmra.mxu3 %vm346_vm1, %v1258_v52 }
 0x377   : > { %v777_v62 = vpop.permute.xlu1 %776 }
 0x37d   : > { %1267 = vmatmul.msk.f32.gmra.mxu3 %vm346_vm1, %v1259_v53 }
 0x385   : > { %1268 = vmatmul.msk.f32.gmra.mxu3 %vm346_vm1, %v1260_v54 }
 0x38d   : > { %1269 = vmatmul.msk.f32.gmra.mxu3 %vm346_vm1, %v1261_v55 }
 0x3f8   : > { %v818_v56 = vpop.f32.mrf.mxu3 }
 0x3f9   : > { %v819_v4 = vadd.f32 %v818_v56, %v772_v3 }
 0x3fb   : > { %v830_v13 = vadd.f32 %v819_v4, %v1553_v5  ;;  %v1272_v5 = vld [vmem:[%s1818_s2 + $0xd0] sm:$0xff] }
 0x400   : > { %v821_v57 = vpop.f32.mrf.mxu3 }
 0x401   : > { %v822_v0 = vadd.f32 %v821_v57, %v777_v62 }
 0x403   : > { %v831_v11 = vadd.f32 %v822_v0, %v1549_v44  ;;  %v1271_v44 = vld [vmem:[%s1818_s2 + $0xc8] sm:$0xff] }
 0x405   : > { %v1675_v15 = vmul.f32 %v1534_v36, %v831_v11 }
 0x408   : > { %v824_v59 = vpop.f32.mrf.mxu3 }
 0x409   : > { %v825_v61 = vadd.f32 %v824_v59, %v782_v60 }
 0x40b   : > { %v832_v8 = vadd.f32 %v825_v61, %v1545_v43  ;;  %v1270_v43 = vld [vmem:[%s1818_s2 + $0xc0] sm:$0xff] }
 0x40d   : > { %v1671_v14 = vmul.f32 %v1534_v36, %v832_v8 }
 0x410   : > { %v827_v63 = vpop.f32.mrf.mxu3 }
 0x411   : > { %v828_v2 = vadd.f32 %v827_v63, %v787_v58 }
 0x413   : > { %v833_v10 = vadd.f32 %v828_v2, %v1540_v41  ;;  %v1679_v41 = vmul.f32 %v1534_v36, %v830_v13 }
 0x415   : > { %v1666_v12 = vmul.f32 %v1534_v36, %v833_v10 }
 0x417   : > { %899 = vmatpush.msrb.mxu1 %v1666_v12 }
 0x419   : > { %900 = vmatpush.msrb.mxu1 %v1671_v14 }
 0x41b   : > { %901 = vmatpush.msrb.mxu1 %v1675_v15 }
 0x41d   : > { %902 = vmatpush.msrb.mxu1 %v1679_v41 }
 0x41e   : > { %1282 = vmatmul.msk.f32.vlgmr.msrb.gmra.mxu1 %vm346_vm1, %v1270_v43 }
 0x426   : > { %1283 = vmatmul.msk.f32.gmra.mxu1 %vm346_vm1, %v1271_v44 }
 0x42e   : > { %1284 = vmatmul.msk.f32.gmra.mxu1 %vm346_vm1, %v1272_v5 }
 0x436   : > { %1285 = vmatmul.msk.f32.gmra.mxu1 %vm346_vm1, %v1273_v16 }
 0x43e   : > { %1286 = vmatmul.msk.f32.gmra.mxu1 %vm346_vm1, %v1274_v17 }
 0x446   : > { %1287 = vmatmul.msk.f32.gmra.mxu1 %vm346_vm1, %v1275_v18 }
 0x44e   : > { %1288 = vmatmul.msk.f32.gmra.mxu1 %vm346_vm1, %v1276_v19 }
 0x456   : > { %1289 = vmatmul.msk.f32.gmra.mxu1 %vm346_vm1, %v1277_v20 }
 0x45e   : > { %1290 = vmatmul.msk.f32.gmra.mxu1 %vm346_vm1, %v1278_v21 }
 0x466   : > { %1291 = vmatmul.msk.f32.gmra.mxu1 %vm346_vm1, %v1279_v22 }
 0x46e   : > { %1292 = vmatmul.msk.f32.gmra.mxu1 %vm346_vm1, %v1280_v23 }
 0x476   : > { %1293 = vmatmul.msk.f32.gmra.mxu1 %vm346_vm1, %v1281_v24  ;;  %v1298_v24 = vld [vmem:[%s1820_s4 + $0x40] sm:$0xff] }
 0x49b   : > { %v904_v25 = vpop.f32.mrf.mxu1 }
 0x49c   : > { %940 = vrot.lane.b32.xlu0 %v904_v25, %s1352_s24  ;;  %v1300_v25 = vld [vmem:[%s1820_s4 + $0x50] sm:$0xff] }
 0x4a3   : > { %v907_v26 = vpop.f32.mrf.mxu1 }
 0x4a4   : > { %942 = vrot.lane.b32.xlu0 %v907_v26, %s1352_s24  ;;  %v1301_v26 = vld [vmem:[%s1820_s4 + $0x58] sm:$0xff] }
 0x4ab   : > { %v910_v27 = vpop.f32.mrf.mxu1 }
 0x4ac   : > { %944 = vrot.lane.b32.xlu1 %v910_v27, %s1352_s24 }
 0x4b3   : > { %v913_v28 = vpop.f32.mrf.mxu1 }
 0x4b4   : > { %946 = vrot.lane.b32.xlu0 %v913_v28, %s1352_s24 }
 0x4bb   : > { %v916_v29 = vpop.f32.mrf.mxu1 }
 0x4c3   : > { %v919_v30 = vpop.f32.mrf.mxu1 }
 0x4cb   : > { %v922_v31 = vpop.f32.mrf.mxu1 }
 0x4d3   : > { %v925_v32 = vpop.f32.mrf.mxu1 }
 0x4db   : > { %v928_v33 = vpop.f32.mrf.mxu1 }
 0x4dc   : > { %948 = vrot.lane.b32.xlu0 %v928_v33, %s1353_s25 }
 0x4e3   : > { %v931_v35 = vpop.f32.mrf.mxu1 }
 0x4e4   : > { %1038 = vperm.xlu0 %1337, %v1305_v34   ;;  %950 = vrot.lane.b32.xlu1 %v931_v35, %s1353_s25 }
 0x4eb   : > { %v934_v38 = vpop.f32.mrf.mxu1 }
 0x4ec   : > { %1023 = vperm.xlu0 %1337, %v1302_v37   ;;  %952 = vrot.lane.b32.xlu1 %v934_v38, %s1353_s25 }
 0x4f3   : > { %v937_v40 = vpop.f32.mrf.mxu1 }
 0x4f4   : > { %990 = vperm.xlu1 %1336, %v1295_v39   ;;  %954 = vrot.lane.b32.xlu2 %v937_v40, %s1353_s25 }
 0x4fc   : > { %1033 = vperm.xlu1 %1336, %v1304_v42   ;;  %995 = vperm.xlu2 %1335, %v1296_v6  }
 0x504   : > { %1096 = vperm.xlu1 %1336, %v1092_v7   ;;  %985 = vperm.xlu2 %1335, %v1294_v9  }
 0x50c   : > { %1028 = vperm.xlu2 %1335, %v1303_v45  }
 0x50e   : > { %v941_v47 = vpop.permute.xlu0 %940 }
 0x50f   : > { %v959_v3 = vsel %vm956_vm6, %v941_v47, 0.0 }
 0x510   : > { %v963_v43 = vadd.f32 %v959_v3, %v916_v29 }
 0x514   : > { %1101 = vperm.xlu2 %1335, %v1093_v46  }
 0x516   : > { %v943_v48 = vpop.permute.xlu0 %942 }
 0x517   : > { %v960_v4 = vsel %vm956_vm6, %v943_v48, 0.0 }
 0x518   : > { %v964_v44 = vadd.f32 %v960_v4, %v919_v30 }
 0x51e   : > { %v945_v52 = vpop.permute.xlu1 %944 }
 0x51f   : > { %v961_v61 = vsel %vm956_vm6, %v945_v52, 0.0 }
 0x520   : > { %v965_v62 = vadd.f32 %v961_v61, %v922_v31 }
 0x526   : > { %v947_v50 = vpop.permute.xlu0 %946 }
 0x527   : > { %v962_v51 = vsel %vm956_vm6, %v947_v50, 0.0 }
 0x528   : > { %v966_v53 = vadd.f32 %v962_v51, %v925_v32 }
 0x54e   : > { %v955_v54 = vpop.permute.xlu2 %954  ;;  %v949_v0 = vpop.permute.xlu0 %948 }
 0x54f   : > { %v973_v55 = vsel %vm967_vm7, %v955_v54, 0.0  ;;  %v970_v10 = vsel %vm967_vm7, %v949_v0, 0.0 }
 0x550   : > { %v977_v56 = vadd.f32 %v973_v55, %v966_v53  ;;  %v974_v17 = vadd.f32 %v970_v10, %v963_v43 }
 0x552   : > { %v1006_v57 = vadd.f32 %v1001_v49, %v977_v56 }
 0x554   : > { %v1010_v58 = vmax.f32 %v1006_v57, 0.0 }
 0x556   : > { %v951_v59 = vpop.permute.xlu1 %950  ;;  %1065 = vmatpush.msra.mxu3 %v1010_v58  ;;  %v996_v60 = vpop.permute.xlu2 %995 }
 0x557   : > { %v971_v11 = vsel %vm967_vm7, %v951_v59, 0.0  ;;  %v1039_v29 = vpop.permute.xlu0 %1038 }
 0x558   : > { %v975_v18 = vadd.f32 %v971_v11, %v964_v44 }
 0x55e   : > { %v953_v63 = vpop.permute.xlu1 %952  ;;  %v986_v5 = vpop.permute.xlu2 %985 }
 0x55f   : > { %v972_v2 = vsel %vm967_vm7, %v953_v63, 0.0  ;;  %v1003_v20 = vadd.f32 %v986_v5, %v974_v17  ;;  %v1024_v38 = vpop.permute.xlu0 %1023 }
 0x560   : > { %v976_v8 = vadd.f32 %v972_v2, %v965_v62 }
 0x561   : > { %v1007_v23 = vmax.f32 %v1003_v20, 0.0 }
 0x562   : > { %v1005_v13 = vadd.f32 %v996_v60, %v976_v8 }
 0x564   : > { %v1009_v16 = vmax.f32 %v1005_v13, 0.0 }
 0x566   : > { %v991_v19 = vpop.permute.xlu1 %990  ;;  %1066 = vmatpush.msra.mxu3 %v1009_v16  ;;  %v1029_v33 = vpop.permute.xlu2 %1028 }
 0x567   : > { %v1004_v21 = vadd.f32 %v991_v19, %v975_v18 }
 0x569   : > { %v1008_v22 = vmax.f32 %v1004_v21, 0.0 }
 0x56b   : > { %1067 = vmatpush.msra.mxu3 %v1008_v22 }
 0x56d   : > { %1068 = vmatpush.msra.mxu3 %v1007_v23 }
 0x56e   : > { %1306 = vmatmul.msk.f32.vlgmr.msra.gmra.mxu3 %vm346_vm1, %v1298_v24  ;;  %v1034_v31 = vpop.permute.xlu1 %1033  ;;  %v1102_v50 = vpop.permute.xlu2 %1101 }
 0x576   : > { %1307 = vmatmul.msk.f32.gmra.mxu3 %vm346_vm1, %v1299_v1 }
 0x57e   : > { %1308 = vmatmul.msk.f32.gmra.mxu3 %vm346_vm1, %v1300_v25 }
 0x586   : > { %1309 = vmatmul.msk.f32.gmra.mxu3 %vm346_vm1, %v1301_v26 }
 0x5f1   : > { %v1070_v27 = vpop.f32.mrf.mxu3 }
 0x5f2   : > { %v1071_v39 = vadd.f32 %v1070_v27, %v1024_v38 }
 0x5f4   : > { %v1082_v9 = vadd.f32 %v1071_v39, %v1679_v41 }
 0x5f6   : > { %v1086_v47 = vmul.f32 %v1534_v36, %v1082_v9 }
 0x5f9   : > { %v1073_v28 = vpop.f32.mrf.mxu3 }
 0x5fa   : > { %v1074_v35 = vadd.f32 %v1073_v28, %v1029_v33 }
 0x5fc   : > { %v1083_v6 = vadd.f32 %v1074_v35, %v1675_v15  ;;  %v1097_v15 = vpop.permute.xlu1 %1096 }
 0x5fe   : > { %v1087_v46 = vmul.f32 %v1534_v36, %v1083_v6 }
 0x601   : > { %v1076_v30 = vpop.f32.mrf.mxu3 }
 0x602   : > { %v1077_v32 = vadd.f32 %v1076_v30, %v1034_v31 }
 0x604   : > { %v1084_v40 = vadd.f32 %v1077_v32, %v1671_v14  ;;  %v1090_v14 = vld [vmem:[%s1822_s6] sm:$0xff] }
 0x606   : > { %v1088_v45 = vmul.f32 %v1534_v36, %v1084_v40 }
 0x609   : > { %v1079_v34 = vpop.f32.mrf.mxu3 }
 0x60a   : > { %v1080_v37 = vadd.f32 %v1079_v34, %v1039_v29 }
 0x60c   : > { %v1085_v42 = vadd.f32 %v1080_v37, %v1666_v12  ;;  %v1091_v12 = vld [vmem:[%s1822_s6 + $0x8] sm:$0xff] }
 0x60e   : > { %v1089_v7 = vmul.f32 %v1534_v36, %v1085_v42 }
 0x610   : > { %1122 = vmatpush.msrb.mxu3 %v1089_v7 }
 0x612   : > { %1123 = vmatpush.msrb.mxu3 %v1088_v45 }
 0x614   : > { %1124 = vmatpush.msrb.mxu3 %v1087_v46 }
 0x616   : > { %1125 = vmatpush.msrb.mxu3 %v1086_v47 }
 0x617   : > { %1310 = vmatmul.msk.f32.vlgmr.msrb.gmra.mxu3 %vm346_vm1, %v1090_v14 }
 0x61f   : > { %1311 = vmatmul.msk.f32.gmra.mxu3 %vm346_vm1, %v1091_v12 }
 0x69a   : > { %v1127_v41 = vpop.f32.mrf.mxu3 }
 0x69b   : > { %v1128_v48 = vadd.f32 %v1127_v41, %v1097_v15 }
 0x69d   : > { %v1133_v49 = vmul.f32 %v1534_v36, %v1128_v48 }
 0x69f   : > { %1135 = vst [vmem:[%s319_s19] sm:$0xff] %v1133_v49 }
 0x6a2   : > { %v1130_v51 = vpop.f32.mrf.mxu3 }
 0x6a3   : > { %v1131_v52 = vadd.f32 %v1130_v51, %v1102_v50 }
 0x6a5   : > { %v1134_v53 = vmul.f32 %v1534_v36, %v1131_v52 }
 0x6a7   : > { %1136 = vst [vmem:[%s319_s19 + $0x8] sm:$0xff] %v1134_v53 }
 0x6a8 PF: > { %s18_s27 = sadd.s32 1, %s1345_s27  }
 0x6a9   : > { %p15_p4 = scmp.ge.s32.totalorder %s18_s27, 4  }
 0x6ab   :  { %17 = sbr.rel (!%p15_p4) target bundleno = 1 (0x1), region = 93 }

// kernel: _lambda_.5
= control target key start
LH: loop header
LB: loop body
LE: loop exit
PB: predicated region body
PF: predicated region fallthrough
CT: control target
= control target key end

     0   :  { %s1596_s13 = smov 0   ;;  %s2073_s0 = inlined_call_operand.vmem [shape: f32[2,16,128], index: 0, kind: input, shape index: {}]   ;;  %s2074_s1 = inlined_call_operand.vmem [shape: f32[2,1,128], index: 1, kind: input, shape index: {}]   ;;  %s2075_s2 = inlined_call_operand.vmem [shape: f32[32,16], index: 2, kind: input, shape index: {}]   ;;  %s2076_s3 = inlined_call_operand.vmem [shape: f32[32,1], index: 3, kind: input, shape index: {}]   ;;  %s2077_s4 = inlined_call_operand.vmem [shape: f32[3,96,32], index: 4, kind: input, shape index: {}]   ;;  %s2078_s5 = inlined_call_operand.vmem [shape: f32[3,32,1], index: 5, kind: input, shape index: {}]   ;;  %s2079_s6 = inlined_call_operand.vmem [shape: f32[3,32,32], index: 6, kind: input, shape index: {}]   ;;  %s2080_s7 = inlined_call_operand.vmem [shape: f32[3,32,1], index: 7, kind: input, shape index: {}]   ;;  %s2081_s8 = inlined_call_operand.vmem [shape: f32[16,32], index: 8, kind: input, shape index: {}]   ;;  %s2082_s9 = inlined_call_operand.vmem [shape: f32[16,1], index: 9, kind: input, shape index: {}]   ;;  %s2083_s10 = inlined_call_operand.vmem [shape: f32[2,16,128], index: 10, kind: output, shape index: {}]  }
   0x1 LB: > { %s1374_s14 = sadd.s32 4294967295, %s1532_s13   ;;  %p1378_p0 = scmp.ge.s32.totalorder %s1532_s13, 1  ;;  %s1532_s13 = sphi %s1596_s13, %s20_s13  }
   0x2   : > { %p320_p1 = scmp.lt.s32.totalorder %s1532_s13, 3 }
   0x4   : > { %p321_p2 = pnand %p1378_p0, %p320_p1 }
   0x5   : > { %p361_p3 = scmp.lt.s32.totalorder (!%p321_p2), %s1374_s14, 1  ;;  %s1535_s12 = smov (!%p321_p2), 1  }
   0x6   : > { %324 = sbr.rel (%p321_p2) target bundleno = 1910 (0x776), region = 60  ;;  %s1536_s16 = smov (!%p321_p2), 127  }
   0x7   : > { %s1537_s11 = smov (!%p321_p2), 2   ;;  %s1539_s30 = smov (!%p321_p2), 4  }
   0xb   : > { %v377_v0 = vlaneseq  ;;  %s2085_s14 = smov (!%p361_p3, %s1374_s14), 1  ;;  %v438_v24 = vld [vmem:[%s2076_s3 + $0x8] sm:$0xff]  ;;  %v1534_v25 = vmov 0   ;;  %v437_v29 = vld [vmem:[%s2076_s3] sm:$0xff]  ;;  %v440_v30 = vld [vmem:[%s2076_s3 + $0x18] sm:$0xff]  ;;  %vm461_vm5 = vcmask 130048  }
   0xc   : > { %s1491_s15 = sshll.u32 %s2085_s14, 4  ;;  %s368_s18 = scalar_lea.vmem %s2074_s1, %s2085_s14  ;;  %1517 = vset.pattern.permute.xlu1 %v1534_v25  ;;  %1516 = vset.pattern.permute.xlu0 %v1534_v25  ;;  %v439_v34 = vld [vmem:[%s2076_s3 + $0x10] sm:$0xff]  ;;  %v653_v43 = vld [vmem:[%s2078_s5 + $0x18] sm:$0xff]  ;;  %v433_v48 = vld [vmem:[%s2075_s2] sm:$0xff]  ;;  %vm522_vm7 = vcmask 261120  }
   0xd   : > { %v380_v1 = vshrl.u32 %v377_v0, 7  ;;  %s365_s21 = scalar_lea.vmem %s2073_s0, %s1491_s15  ;;  %448 = vperm.xlu1 %1517, %v438_v24   ;;  %1518 = vset.pattern.permute.xlu2 %v1534_v25  ;;  %v1636_v41 = vld [vmem:[%s368_s18] ss:$0 sm:$0xff]  ;;  %v434_v49 = vld [vmem:[%s2075_s2 + $0x8] sm:$0xff]  ;;  %v435_v50 = vld [vmem:[%s2075_s2 + $0x10] sm:$0xff]  ;;  %v1656_v53 = vand.u32 127, %v377_v0 }
   0xe   : > { %v374_v3 = vld [vmem:[%s365_s21] sm:$0xff]  ;;  %v375_v4 = vld [vmem:[%s365_s21 + $0x8] sm:$0xff]  ;;  %458 = vperm.xlu0 %1516, %v440_v30   ;;  %v436_v51 = vld [vmem:[%s2075_s2 + $0x18] sm:$0xff] }
   0xf   : > { %v381_v2 = vadd.s32 8, %v380_v1  ;;  %vm503_vm6 = vcmp.lt.s32.totalorder %v1656_v53, 100  ;;  %v1434_v30 = vld [vmem:[%s2078_s5 + $0x38] sm:$0xff]  ;;  %vm628_vm8 = vcmp.ge.s32.totalorder %v1656_v53, 1  ;;  %vm639_vm9 = vcmp.lt.s32.totalorder %v1656_v53, 127 }
  0x10   : > { %vm877_vm10 = vcmp.ge.s32.totalorder %v1656_v53, 2  ;;  %vm888_vm11 = vcmp.lt.s32.totalorder %v1656_v53, 126  ;;  %vm1129_vm12 = vcmp.ge.s32.totalorder %v1656_v53, 4  ;;  %vm1140_vm13 = vcmp.lt.s32.totalorder %v1656_v53, 124  ;;  %v1476_v53 = vld [vmem:[%s2079_s6 + $0x48] sm:$0xff] }
  0x11   : > { %vm383_vm0 = vcmp.lt.s32.totalorder %v381_v2, 10 }
  0x12   : > { %v389_v5 = vsel %vm383_vm0, %v375_v4, -3.4028235e+38 }
  0x13   : > { %v390_v6 = vmax.f32 %v374_v3, %v389_v5  ;;  %v510_v5 = vld [vmem:[%s2077_s4] sm:$0xff] }
  0x15   : > { %v391_v7 = vrot.slane %v390_v6, 4  ;;  %443 = vperm.xlu1 %1517, %v437_v29  }
  0x16   : > { %453 = vperm.xlu0 %1516, %v439_v34   ;;  %v688_v34 = vld [vmem:[%s2080_s7 + $0x10] sm:$0xff] }
  0x17   : > { %v392_v8 = vmax.f32 %v390_v6, %v391_v7  ;;  %v511_v6 = vld [vmem:[%s2077_s4 + $0x8] sm:$0xff]  ;;  %v512_v7 = vld [vmem:[%s2077_s4 + $0x10] sm:$0xff] }
  0x19   : > { %v393_v9 = vrot.slane %v392_v8, 2 }
  0x1b   : > { %v394_v10 = vmax.f32 %v392_v8, %v393_v9  ;;  %v513_v8 = vld [vmem:[%s2077_s4 + $0x18] sm:$0xff]  ;;  %v514_v9 = vld [vmem:[%s2077_s4 + $0x20] sm:$0xff] }
  0x1d   : > { %v395_v11 = vrot.slane %v394_v10, 1 }
  0x1e   : > { %671 = vperm.xlu0 %1516, %v653_v43  }
  0x1f   : > { %v396_v12 = vmax.f32 %v394_v10, %v395_v11  ;;  %v515_v10 = vld [vmem:[%s2077_s4 + $0x28] sm:$0xff]  ;;  %v516_v11 = vld [vmem:[%s2077_s4 + $0x30] sm:$0xff] }
  0x21   : > { %v397_v13 = vsub.f32 %v374_v3, %v396_v12  ;;  %v398_v14 = vsub.f32 %v375_v4, %v396_v12  ;;  %v517_v12 = vld [vmem:[%s2077_s4 + $0x38] sm:$0xff] }
  0x23   : > { %v399_v15 = vmul.f32 1.442695, %v397_v13  ;;  %v401_v16 = vmul.f32 1.442695, %v398_v14  ;;  %v518_v13 = vld [vmem:[%s2077_s4 + $0x40] sm:$0xff]  ;;  %v519_v14 = vld [vmem:[%s2077_s4 + $0x48] sm:$0xff] }
  0x25   : > { %1520 = vpow2.f32 %v399_v15  ;;  %v520_v15 = vld [vmem:[%s2077_s4 + $0x50] sm:$0xff] }
  0x26   : > { %1522 = vpow2.f32 %v401_v16  ;;  %v521_v16 = vld [vmem:[%s2077_s4 + $0x58] sm:$0xff] }
  0x2b   : > { %v1521_v17 = vpop.eup %1520 }
  0x2c   : > { %v1523_v18 = vpop.eup %1522 }
  0x2d   : > { %v404_v19 = vsel %vm383_vm0, %v1523_v18, 0.0 }
  0x2e   : > { %v405_v20 = vadd.f32 %v1521_v17, %v404_v19 }
  0x30   : > { %v406_v21 = vrot.slane %v405_v20, 4 }
  0x32   : > { %v407_v22 = vadd.f32 %v406_v21, %v405_v20 }
  0x34   : > { %v408_v23 = vrot.slane %v407_v22, 2 }
  0x36   : > { %v409_v26 = vadd.f32 %v408_v23, %v407_v22 }
  0x38   : > { %v410_v27 = vrot.slane %v409_v26, 1 }
  0x3a   : > { %v411_v28 = vadd.f32 %v410_v27, %v409_v26  ;;  %v689_v26 = vld [vmem:[%s2080_s7 + $0x18] sm:$0xff] }
  0x3c   : > { %1524 = vrcp.f32 %v411_v28  ;;  %v423_v33 = vand.u32 2147483648, %v411_v28  ;;  %vm417_vm1 = vweird.f32 %v411_v28  ;;  %v421_v36 = vand.u32 2147483647, %v411_v28 }
  0x3e   : > { %v424_v38 = vor.u32 1.1754944e-38, %v423_v33  ;;  %vm422_vm4 = vcmp.eq.f32.partialorder %v421_v36, 8.507059e+37  ;;  %v652_v33 = vld [vmem:[%s2078_s5 + $0x10] sm:$0xff]  ;;  %v687_v36 = vld [vmem:[%s2080_s7 + $0x8] sm:$0xff] }
  0x42   : > { %v1525_v31 = vpop.eup %1524 }
  0x43   : > { %v413_v32 = vmul.f32 %v1525_v31, %v411_v28  ;;  %vm418_vm2 = vweird.f32 %v1525_v31  ;;  %v686_v28 = vld [vmem:[%s2080_s7] sm:$0xff] }
  0x44   : > { %vm419_vm3 = vmor %vm417_vm1, %vm418_vm2 }
  0x45   : > { %v414_v35 = vsub.f32 1.0, %v413_v32 }
  0x47   : > { %v415_v37 = vmul.f32 %v1525_v31, %v414_v35  ;;  %v650_v35 = vld [vmem:[%s2078_s5] sm:$0xff] }
  0x49   : > { %v416_v39 = vadd.f32 %v1525_v31, %v415_v37 }
  0x4b   : > { %v420_v40 = vsel %vm419_vm3, %v1525_v31, %v416_v39  ;;  %v651_v31 = vld [vmem:[%s2078_s5 + $0x8] sm:$0xff] }
  0x4c   : > { %v425_v42 = vsel %vm422_vm4, %v424_v38, %v420_v40 }
  0x4d   : > { %v427_v44 = vmul.f32 %v425_v42, %v404_v19  ;;  %v426_v45 = vmul.f32 %v1521_v17, %v425_v42 }
  0x4f   : > { %v432_v46 = vmul.f32 %v1636_v41, %v427_v44  ;;  %v431_v47 = vmul.f32 %v1636_v41, %v426_v45 }
  0x51   : > { %488 = vmatpush.msra.mxu0 %v432_v46 }
  0x53   : > { %489 = vmatpush.msra.mxu0 %v431_v47 }
  0x54   : > { %1383 = vmatmul.msk.f32.vlgmr.msra.gmra.mxu0 %vm461_vm5, %v433_v48 }
  0x5c   : > { %1384 = vmatmul.msk.f32.gmra.mxu0 %vm461_vm5, %v434_v49 }
  0x64   : > { %1385 = vmatmul.msk.f32.gmra.mxu0 %vm461_vm5, %v435_v50 }
  0x6c   : > { %1386 = vmatmul.msk.f32.gmra.mxu0 %vm461_vm5, %v436_v51 }
  0x7f   : > { %v449_v52 = vpop.permute.xlu1 %448 }
  0x80   : > { %v459_v58 = vpop.permute.xlu0 %458 }
  0x87   : > { %v444_v54 = vpop.permute.xlu1 %443 }
  0x88   : > { %v454_v62 = vpop.permute.xlu0 %453 }
  0x90   : > { %v672_v42 = vpop.permute.xlu0 %671 }
  0xd1   : > { %v491_v55 = vpop.f32.mrf.mxu0 }
  0xd2   : > { %v492_v56 = vadd.f32 %v491_v55, %v444_v54 }
  0xd4   : > { %v1661_v57 = vsel %vm503_vm6, %v492_v56, 0.0 }
  0xd9   : > { %v494_v59 = vpop.f32.mrf.mxu0 }
  0xda   : > { %v495_v60 = vadd.f32 %v494_v59, %v449_v52 }
  0xdc   : > { %v1665_v61 = vsel %vm503_vm6, %v495_v60, 0.0 }
  0xe1   : > { %v497_v63 = vpop.f32.mrf.mxu0 }
  0xe2   : > { %v498_v0 = vadd.f32 %v497_v63, %v454_v62 }
  0xe4   : > { %v1669_v1 = vsel %vm503_vm6, %v498_v0, 0.0 }
  0xe9   : > { %v500_v2 = vpop.f32.mrf.mxu0 }
  0xea   : > { %v501_v3 = vadd.f32 %v500_v2, %v459_v58 }
  0xec   : > { %v1673_v4 = vsel %vm503_vm6, %v501_v3, 0.0  ;;  %1387 = vmatpush.msk.msra.mxu1 %vm503_vm6, %v501_v3 }
  0xee   : > { %1388 = vmatpush.msk.msra.mxu1 %vm503_vm6, %v498_v0 }
  0xf0   : > { %1389 = vmatpush.msk.msra.mxu1 %vm503_vm6, %v495_v60 }
  0xf2   : > { %1390 = vmatpush.msk.msra.mxu1 %vm503_vm6, %v492_v56 }
  0xf3   : > { %1391 = vmatmul.msk.f32.vlgmr.msra.gmra.mxu1 %vm522_vm7, %v510_v5 }
  0xfb   : > { %1392 = vmatmul.msk.f32.gmra.mxu1 %vm522_vm7, %v511_v6 }
 0x103   : > { %1393 = vmatmul.msk.f32.gmra.mxu1 %vm522_vm7, %v512_v7 }
 0x10b   : > { %1394 = vmatmul.msk.f32.gmra.mxu1 %vm522_vm7, %v513_v8 }
 0x113   : > { %1395 = vmatmul.msk.f32.gmra.mxu1 %vm522_vm7, %v514_v9 }
 0x11b   : > { %1396 = vmatmul.msk.f32.gmra.mxu1 %vm522_vm7, %v515_v10 }
 0x123   : > { %1397 = vmatmul.msk.f32.gmra.mxu1 %vm522_vm7, %v516_v11 }
 0x12b   : > { %1398 = vmatmul.msk.f32.gmra.mxu1 %vm522_vm7, %v517_v12 }
 0x133   : > { %1399 = vmatmul.msk.f32.gmra.mxu1 %vm522_vm7, %v518_v13 }
 0x13b   : > { %1400 = vmatmul.msk.f32.gmra.mxu1 %vm522_vm7, %v519_v14 }
 0x143   : > { %1401 = vmatmul.msk.f32.gmra.mxu1 %vm522_vm7, %v520_v15  ;;  %v682_v15 = vld [vmem:[%s2079_s6] sm:$0xff] }
 0x14b   : > { %1402 = vmatmul.msk.f32.gmra.mxu1 %vm522_vm7, %v521_v16  ;;  %v683_v16 = vld [vmem:[%s2079_s6 + $0x8] sm:$0xff] }
 0x170   : > { %v576_v17 = vpop.f32.mrf.mxu1 }
 0x171   : > { %612 = vrot.lane.b32.xlu1 %v576_v17, %s1535_s12  ;;  %v685_v17 = vld [vmem:[%s2079_s6 + $0x18] sm:$0xff] }
 0x178   : > { %v579_v18 = vpop.f32.mrf.mxu1 }
 0x179   : > { %614 = vrot.lane.b32.xlu1 %v579_v18, %s1535_s12  ;;  %v684_v18 = vld [vmem:[%s2079_s6 + $0x10] sm:$0xff] }
 0x180   : > { %v582_v19 = vpop.f32.mrf.mxu1 }
 0x181   : > { %616 = vrot.lane.b32.xlu2 %v582_v19, %s1535_s12 }
 0x188   : > { %v585_v20 = vpop.f32.mrf.mxu1 }
 0x189   : > { %618 = vrot.lane.b32.xlu2 %v585_v20, %s1535_s12  ;;  %s1538_s12 = smov 126  }
 0x190   : > { %v1731_v21 = vpop.f32.mrf.mxu1 }
 0x198   : > { %v591_v22 = vpop.f32.mrf.mxu1 }
 0x1a0   : > { %v594_v23 = vpop.f32.mrf.mxu1 }
 0x1a8   : > { %v597_v24 = vpop.f32.mrf.mxu1 }
 0x1b0   : > { %v600_v25 = vpop.f32.mrf.mxu1 }
 0x1b1   : > { %620 = vrot.lane.b32.xlu1 %v600_v25, %s1536_s16 }
 0x1b8   : > { %v603_v27 = vpop.f32.mrf.mxu1 }
 0x1b9   : > { %707 = vperm.xlu1 %1517, %v689_v26   ;;  %622 = vrot.lane.b32.xlu2 %v603_v27, %s1536_s16 }
 0x1c0   : > { %v606_v29 = vpop.f32.mrf.mxu1 }
 0x1c1   : > { %692 = vperm.xlu1 %1517, %v686_v28   ;;  %624 = vrot.lane.b32.xlu2 %v606_v29, %s1536_s16 }
 0x1c8   : > { %v609_v32 = vpop.f32.mrf.mxu1 }
 0x1c9   : > { %921 = vperm.xlu1 %1517, %v1434_v30   ;;  %661 = vperm.xlu2 %1518, %v651_v31  }
 0x1ca   : > { %626 = vrot.lane.b32.xlu0 %v609_v32, %s1536_s16 }
 0x1d1   : > { %702 = vperm.xlu2 %1518, %v688_v34  }
 0x1d2   : > { %666 = vperm.xlu0 %1516, %v652_v33  }
 0x1da   : > { %656 = vperm.xlu0 %1516, %v650_v35  }
 0x1db   : > { %v617_v37 = vpop.permute.xlu2 %616 }
 0x1dc   : > { %v633_v49 = vsel %vm628_vm8, %v617_v37, 0.0 }
 0x1dd   : > { %v637_v56 = vadd.f32 %v633_v49, %v594_v23 }
 0x1e2   : > { %697 = vperm.xlu0 %1516, %v687_v36  }
 0x1e3   : > { %v619_v38 = vpop.permute.xlu2 %618  ;;  %v613_v40 = vpop.permute.xlu1 %612 }
 0x1e4   : > { %v634_v44 = vsel %vm628_vm8, %v619_v38, 0.0  ;;  %v631_v6 = vsel %vm628_vm8, %v613_v40, 0.0  ;;  %v1410_v38 = vld [vmem:[%s2077_s4 + $0x78] sm:$0xff]  ;;  %v1412_v40 = vld [vmem:[%s2077_s4 + $0x88] sm:$0xff] }
 0x1e5   : > { %v638_v46 = vadd.f32 %v634_v44, %v597_v24  ;;  %v635_v9 = vadd.f32 %v631_v6, %v1731_v21  ;;  %v1415_v44 = vld [vmem:[%s2077_s4 + $0xa0] sm:$0xff]  ;;  %v1433_v6 = vld [vmem:[%s2078_s5 + $0x30] sm:$0xff] }
 0x1eb   : > { %v615_v45 = vpop.permute.xlu1 %614 }
 0x1ec   : > { %v632_v50 = vsel %vm628_vm8, %v615_v45, 0.0  ;;  %v1416_v45 = vld [vmem:[%s2077_s4 + $0xa8] sm:$0xff] }
 0x1ed   : > { %v636_v58 = vadd.f32 %v632_v50, %v591_v22 }
 0x213   : > { %v623_v39 = vpop.permute.xlu2 %622 }
 0x214   : > { %v643_v52 = vsel %vm639_vm9, %v623_v39, 0.0  ;;  %v1411_v39 = vld [vmem:[%s2077_s4 + $0x80] sm:$0xff] }
 0x215   : > { %v647_v62 = vadd.f32 %v643_v52, %v636_v58 }
 0x21b   : > { %v625_v43 = vpop.permute.xlu2 %624 }
 0x21c   : > { %v644_v54 = vsel %vm639_vm9, %v625_v43, 0.0  ;;  %v1414_v43 = vld [vmem:[%s2077_s4 + $0x98] sm:$0xff] }
 0x21d   : > { %v648_v63 = vadd.f32 %v644_v54, %v637_v56 }
 0x223   : > { %v662_v59 = vpop.permute.xlu2 %661  ;;  %v621_v2 = vpop.permute.xlu1 %620 }
 0x224   : > { %v675_v3 = vadd.f32 %v662_v59, %v647_v62  ;;  %v642_v8 = vsel %vm639_vm9, %v621_v2, 0.0  ;;  %v1442_v59 = vld [vmem:[%s2080_s7 + $0x38] sm:$0xff]  ;;  %v1439_v62 = vld [vmem:[%s2080_s7 + $0x20] sm:$0xff]  ;;  %v1432_v2 = vld [vmem:[%s2078_s5 + $0x28] sm:$0xff] }
 0x225   : > { %v646_v11 = vadd.f32 %v642_v8, %v635_v9  ;;  %v1440_v8 = vld [vmem:[%s2080_s7 + $0x28] sm:$0xff] }
 0x226   : > { %v679_v10 = vmax.f32 %v675_v3, 0.0 }
 0x22b   : > { %v708_v19 = vpop.permute.xlu1 %707  ;;  %v703_v27 = vpop.permute.xlu2 %702 }
 0x233   : > { %v693_v29 = vpop.permute.xlu1 %692 }
 0x23c   : > { %v627_v47 = vpop.permute.xlu0 %626 }
 0x23d   : > { %v645_v48 = vsel %vm639_vm9, %v627_v47, 0.0  ;;  %v1418_v47 = vld [vmem:[%s2077_s4 + $0xb8] sm:$0xff] }
 0x23e   : > { %v649_v51 = vadd.f32 %v645_v48, %v638_v46  ;;  %v1417_v46 = vld [vmem:[%s2077_s4 + $0xb0] sm:$0xff] }
 0x240   : > { %v677_v55 = vadd.f32 %v672_v42, %v649_v51  ;;  %v1413_v42 = vld [vmem:[%s2077_s4 + $0x90] sm:$0xff] }
 0x242   : > { %v681_v60 = vmax.f32 %v677_v55, 0.0 }
 0x244   : > { %734 = vmatpush.msrb.mxu1 %v681_v60  ;;  %1493 = vmatpush.msra.mxu2 %v681_v60  ;;  %v667_v0 = vpop.permute.xlu0 %666 }
 0x245   : > { %1494 = vmatpush.msra.mxu3 %v681_v60  ;;  %v676_v5 = vadd.f32 %v667_v0, %v648_v63  ;;  %v1474_v0 = vld [vmem:[%s2078_s5 + $0x58] sm:$0xff] }
 0x247   : > { %v680_v7 = vmax.f32 %v676_v5, 0.0  ;;  %v1441_v5 = vld [vmem:[%s2080_s7 + $0x30] sm:$0xff] }
 0x249   : > { %735 = vmatpush.msrb.mxu1 %v680_v7  ;;  %1495 = vmatpush.msra.mxu2 %v680_v7 }
 0x24a   : > { %1496 = vmatpush.msra.mxu3 %v680_v7  ;;  %v1431_v7 = vld [vmem:[%s2078_s5 + $0x20] sm:$0xff] }
 0x24b   : > { %736 = vmatpush.msrb.mxu1 %v679_v10  ;;  %1497 = vmatpush.msra.mxu2 %v679_v10 }
 0x24c   : > { %1498 = vmatpush.msra.mxu3 %v679_v10  ;;  %v657_v12 = vpop.permute.xlu0 %656 }
 0x24d   : > { %v674_v13 = vadd.f32 %v657_v12, %v646_v11 }
 0x24f   : > { %v678_v14 = vmax.f32 %v674_v13, 0.0  ;;  %v922_v13 = vpop.permute.xlu1 %921 }
 0x251   : > { %737 = vmatpush.msrb.mxu1 %v678_v14  ;;  %1499 = vmatpush.msra.mxu2 %v678_v14 }
 0x252   : > { %1500 = vmatpush.msra.mxu3 %v678_v14  ;;  %1403 = vmatmul.msk.f32.vlgmr.msrb.gmra.mxu1 %vm522_vm7, %v682_v15 }
 0x253   : > { %1404 = vmatmul.msk.f32.vlgmr.msra.gmra.mxu2 %vm522_vm7, %v683_v16  ;;  %1406 = vmatmul.msk.f32.vlgmr.msra.gmra.mxu3 %vm522_vm7, %v685_v17 }
 0x254   : > { %v698_v25 = vpop.permute.xlu0 %697 }
 0x25b   : > { %1405 = vmatmul.msk.f32.gmra.mxu2 %vm522_vm7, %v684_v18 }
 0x2cf   : > { %v739_v26 = vpop.f32.mrf.mxu1 }
 0x2d0   : > { %v740_v31 = vadd.f32 %v739_v26, %v693_v29 }
 0x2d2   : > { %v751_v35 = vadd.f32 %v740_v31, %v1661_v57  ;;  %v1408_v57 = vld [vmem:[%s2077_s4 + $0x68] sm:$0xff] }
 0x2d4   : > { %v1809_v37 = vmul.f32 %v1636_v41, %v751_v35 }
 0x2d6   : > { %v742_v20 = vpop.f32.mrf.mxu2  ;;  %v748_v21 = vpop.f32.mrf.mxu3 }
 0x2d7   : > { %v749_v22 = vadd.f32 %v748_v21, %v708_v19  ;;  %v743_v28 = vadd.f32 %v742_v20, %v698_v25 }
 0x2d9   : > { %v754_v23 = vadd.f32 %v749_v22, %v1673_v4  ;;  %v752_v33 = vadd.f32 %v743_v28, %v1665_v61  ;;  %v1407_v61 = vld [vmem:[%s2077_s4 + $0x60] sm:$0xff] }
 0x2db   : > { %v1794_v24 = vmul.f32 %v1636_v41, %v754_v23  ;;  %v1805_v36 = vmul.f32 %v1636_v41, %v752_v33 }
 0x2dd   : > { %820 = vmatpush.msrb.mxu3 %v1794_v24 }
 0x2de   : > { %v745_v30 = vpop.f32.mrf.mxu2 }
 0x2df   : > { %v746_v32 = vadd.f32 %v745_v30, %v703_v27 }
 0x2e1   : > { %v753_v34 = vadd.f32 %v746_v32, %v1669_v1  ;;  %v1409_v1 = vld [vmem:[%s2077_s4 + $0x70] sm:$0xff] }
 0x2e3   : > { %v1801_v4 = vmul.f32 %v1636_v41, %v753_v34 }
 0x2e5   : > { %821 = vmatpush.msrb.mxu3 %v1801_v4 }
 0x2e7   : > { %822 = vmatpush.msrb.mxu3 %v1805_v36 }
 0x2e9   : > { %823 = vmatpush.msrb.mxu3 %v1809_v37 }
 0x2ea   : > { %1419 = vmatmul.msk.f32.vlgmr.msrb.gmra.mxu3 %vm522_vm7, %v1407_v61 }
 0x2f2   : > { %1420 = vmatmul.msk.f32.gmra.mxu3 %vm522_vm7, %v1408_v57 }
 0x2fa   : > { %1421 = vmatmul.msk.f32.gmra.mxu3 %vm522_vm7, %v1409_v1 }
 0x302   : > { %1422 = vmatmul.msk.f32.gmra.mxu3 %vm522_vm7, %v1410_v38 }
 0x30a   : > { %1423 = vmatmul.msk.f32.gmra.mxu3 %vm522_vm7, %v1411_v39 }
 0x312   : > { %1424 = vmatmul.msk.f32.gmra.mxu3 %vm522_vm7, %v1412_v40 }
 0x31a   : > { %1425 = vmatmul.msk.f32.gmra.mxu3 %vm522_vm7, %v1413_v42 }
 0x322   : > { %1426 = vmatmul.msk.f32.gmra.mxu3 %vm522_vm7, %v1414_v43 }
 0x32a   : > { %1427 = vmatmul.msk.f32.gmra.mxu3 %vm522_vm7, %v1415_v44 }
 0x332   : > { %1428 = vmatmul.msk.f32.gmra.mxu3 %vm522_vm7, %v1416_v45 }
 0x33a   : > { %1429 = vmatmul.msk.f32.gmra.mxu3 %vm522_vm7, %v1417_v46  ;;  %v1435_v46 = vld [vmem:[%s2079_s6 + $0x20] sm:$0xff] }
 0x342   : > { %1430 = vmatmul.msk.f32.gmra.mxu3 %vm522_vm7, %v1418_v47  ;;  %v1436_v47 = vld [vmem:[%s2079_s6 + $0x28] sm:$0xff] }
 0x36d   : > { %v825_v48 = vpop.f32.mrf.mxu3 }
 0x36e   : > { %861 = vrot.lane.b32.xlu2 %v825_v48, %s1537_s11  ;;  %v1437_v48 = vld [vmem:[%s2079_s6 + $0x30] sm:$0xff] }
 0x375   : > { %v828_v49 = vpop.f32.mrf.mxu3 }
 0x376   : > { %863 = vrot.lane.b32.xlu2 %v828_v49, %s1537_s11  ;;  %v1438_v49 = vld [vmem:[%s2079_s6 + $0x38] sm:$0xff] }
 0x37d   : > { %v831_v50 = vpop.f32.mrf.mxu3 }
 0x37e   : > { %865 = vrot.lane.b32.xlu0 %v831_v50, %s1537_s11 }
 0x385   : > { %v834_v51 = vpop.f32.mrf.mxu3 }
 0x386   : > { %867 = vrot.lane.b32.xlu2 %v834_v51, %s1537_s11  ;;  %s1540_s11 = smov 124  }
 0x38d   : > { %v837_v52 = vpop.f32.mrf.mxu3 }
 0x395   : > { %v840_v54 = vpop.f32.mrf.mxu3 }
 0x39d   : > { %v843_v55 = vpop.f32.mrf.mxu3 }
 0x3a5   : > { %v846_v56 = vpop.f32.mrf.mxu3 }
 0x3ad   : > { %v849_v58 = vpop.f32.mrf.mxu3 }
 0x3ae   : > { %869 = vrot.lane.b32.xlu2 %v849_v58, %s1538_s12 }
 0x3b5   : > { %v852_v60 = vpop.f32.mrf.mxu3 }
 0x3b6   : > { %959 = vperm.xlu2 %1518, %v1442_v59   ;;  %871 = vrot.lane.b32.xlu0 %v852_v60, %s1538_s12 }
 0x3bd   : > { %v855_v63 = vpop.f32.mrf.mxu3 }
 0x3be   : > { %944 = vperm.xlu2 %1518, %v1439_v62   ;;  %873 = vrot.lane.b32.xlu0 %v855_v63, %s1538_s12 }
 0x3c5   : > { %v858_v3 = vpop.f32.mrf.mxu3 }
 0x3c6   : > { %1173 = vperm.xlu2 %1518, %v1474_v0   ;;  %911 = vperm.xlu0 %1516, %v1432_v2  }
 0x3c7   : > { %875 = vrot.lane.b32.xlu1 %v858_v3, %s1538_s12 }
 0x3c8   : > { %v862_v9 = vpop.permute.xlu2 %861 }
 0x3c9   : > { %v880_v57 = vsel %vm877_vm10, %v862_v9, 0.0 }
 0x3ca   : > { %v884_v39 = vadd.f32 %v880_v57, %v837_v52  ;;  %v1265_v57 = vld [vmem:[%s2082_s9] sm:$0xff] }
 0x3ce   : > { %954 = vperm.xlu0 %1516, %v1441_v5  }
 0x3cf   : > { %916 = vperm.xlu1 %1517, %v1433_v6  }
 0x3d0   : > { %v864_v11 = vpop.permute.xlu2 %863 }
 0x3d1   : > { %v881_v20 = vsel %vm877_vm10, %v864_v11, 0.0  ;;  %v1451_v11 = vld [vmem:[%s2077_s4 + $0xe0] sm:$0xff] }
 0x3d2   : > { %v885_v27 = vadd.f32 %v881_v20, %v840_v54 }
 0x3d7   : > { %906 = vperm.xlu1 %1517, %v1431_v7  }
 0x3df   : > { %949 = vperm.xlu1 %1517, %v1440_v8  }
 0x3e0   : > { %v868_v14 = vpop.permute.xlu2 %867 }
 0x3e1   : > { %v883_v16 = vsel %vm877_vm10, %v868_v14, 0.0  ;;  %v1454_v14 = vld [vmem:[%s2077_s4 + $0xf8] sm:$0xff] }
 0x3e2   : > { %v887_v17 = vadd.f32 %v883_v16, %v846_v56  ;;  %v1456_v16 = vld [vmem:[%s2077_s4 + $0x108] sm:$0xff] }
 0x3f0   : > { %v866_v10 = vpop.permute.xlu0 %865 }
 0x3f1   : > { %v882_v21 = vsel %vm877_vm10, %v866_v10, 0.0  ;;  %v1450_v10 = vld [vmem:[%s2077_s4 + $0xd8] sm:$0xff] }
 0x3f2   : > { %v886_v28 = vadd.f32 %v882_v21, %v843_v55 }
 0x408   : > { %v870_v34 = vpop.permute.xlu2 %869 }
 0x409   : > { %v891_v38 = vsel %vm888_vm11, %v870_v34, 0.0 }
 0x40a   : > { %v895_v42 = vadd.f32 %v891_v38, %v884_v39  ;;  %v1480_v38 = vld [vmem:[%s2080_s7 + $0x48] sm:$0xff] }
 0x40b   : > { %v1266_v39 = vld [vmem:[%s2082_s9 + $0x8] sm:$0xff] }
 0x410   : > { %v960_v52 = vpop.permute.xlu2 %959 }
 0x418   : > { %v945_v63 = vpop.permute.xlu2 %944 }
 0x428   : > { %v872_v12 = vpop.permute.xlu0 %871 }
 0x429   : > { %v892_v23 = vsel %vm888_vm11, %v872_v12, 0.0  ;;  %v1452_v12 = vld [vmem:[%s2077_s4 + $0xe8] sm:$0xff] }
 0x42a   : > { %v896_v31 = vadd.f32 %v892_v23, %v885_v27 }
 0x430   : > { %v874_v15 = vpop.permute.xlu0 %873 }
 0x431   : > { %v893_v25 = vsel %vm888_vm11, %v874_v15, 0.0  ;;  %v1455_v15 = vld [vmem:[%s2077_s4 + $0x100] sm:$0xff] }
 0x432   : > { %v897_v32 = vadd.f32 %v893_v25, %v886_v28 }
 0x438   : > { %v912_v29 = vpop.permute.xlu0 %911 }
 0x439   : > { %v876_v18 = vpop.permute.xlu1 %875  ;;  %v925_v35 = vadd.f32 %v912_v29, %v896_v31  ;;  %v1482_v29 = vld [vmem:[%s2080_s7 + $0x58] sm:$0xff]  ;;  %v1479_v31 = vld [vmem:[%s2080_s7 + $0x40] sm:$0xff] }
 0x43a   : > { %v894_v19 = vsel %vm888_vm11, %v876_v18, 0.0  ;;  %v1458_v18 = vld [vmem:[%s2077_s4 + $0x118] sm:$0xff] }
 0x43b   : > { %v898_v22 = vadd.f32 %v894_v19, %v887_v17  ;;  %v929_v40 = vmax.f32 %v925_v35, 0.0  ;;  %v1457_v17 = vld [vmem:[%s2077_s4 + $0x110] sm:$0xff] }
 0x43c   : > { %v1481_v35 = vld [vmem:[%s2080_s7 + $0x50] sm:$0xff] }
 0x43d   : > { %v927_v26 = vadd.f32 %v922_v13, %v898_v22  ;;  %v1453_v13 = vld [vmem:[%s2077_s4 + $0xf0] sm:$0xff] }
 0x43f   : > { %v931_v30 = vmax.f32 %v927_v26, 0.0 }
 0x440   : > { %v955_v55 = vpop.permute.xlu0 %954 }
 0x441   : > { %986 = vmatpush.msrb.mxu0 %v931_v30  ;;  %v917_v33 = vpop.permute.xlu1 %916 }
 0x442   : > { %v926_v61 = vadd.f32 %v917_v33, %v897_v32  ;;  %v1472_v33 = vld [vmem:[%s2078_s5 + $0x48] sm:$0xff] }
 0x444   : > { %v930_v1 = vmax.f32 %v926_v61, 0.0  ;;  %v1473_v61 = vld [vmem:[%s2078_s5 + $0x50] sm:$0xff] }
 0x446   : > { %987 = vmatpush.msrb.mxu0 %v930_v1  ;;  %v1471_v1 = vld [vmem:[%s2078_s5 + $0x40] sm:$0xff] }
 0x448   : > { %988 = vmatpush.msrb.mxu0 %v929_v40 }
 0x449   : > { %v907_v43 = vpop.permute.xlu1 %906 }
 0x44a   : > { %v924_v44 = vadd.f32 %v907_v43, %v895_v42  ;;  %v1174_v43 = vpop.permute.xlu2 %1173 }
 0x44c   : > { %v928_v45 = vmax.f32 %v924_v44, 0.0 }
 0x44e   : > { %989 = vmatpush.msrb.mxu0 %v928_v45 }
 0x44f   : > { %1443 = vmatmul.msk.f32.vlgmr.msrb.gmra.mxu0 %vm522_vm7, %v1435_v46 }
 0x451   : > { %v950_v58 = vpop.permute.xlu1 %949 }
 0x457   : > { %1444 = vmatmul.msk.f32.gmra.mxu0 %vm522_vm7, %v1436_v47 }
 0x45f   : > { %1445 = vmatmul.msk.f32.gmra.mxu0 %vm522_vm7, %v1437_v48 }
 0x467   : > { %1446 = vmatmul.msk.f32.gmra.mxu0 %vm522_vm7, %v1438_v49 }
 0x4cc   : > { %v991_v50 = vpop.f32.mrf.mxu0 }
 0x4cd   : > { %v992_v0 = vadd.f32 %v991_v50, %v945_v63 }
 0x4cf   : > { %v1003_v7 = vadd.f32 %v992_v0, %v1809_v37  ;;  %v1449_v37 = vld [vmem:[%s2077_s4 + $0xd0] sm:$0xff] }
 0x4d4   : > { %v994_v51 = vpop.f32.mrf.mxu0 }
 0x4d5   : > { %v995_v60 = vadd.f32 %v994_v51, %v950_v58 }
 0x4d7   : > { %v1004_v5 = vadd.f32 %v995_v60, %v1805_v36  ;;  %v1448_v36 = vld [vmem:[%s2077_s4 + $0xc8] sm:$0xff] }
 0x4d9   : > { %v1931_v9 = vmul.f32 %v1636_v41, %v1004_v5 }
 0x4dc   : > { %v997_v54 = vpop.f32.mrf.mxu0 }
 0x4dd   : > { %v998_v56 = vadd.f32 %v997_v54, %v955_v55 }
 0x4df   : > { %v1005_v2 = vadd.f32 %v998_v56, %v1801_v4  ;;  %v1447_v4 = vld [vmem:[%s2077_s4 + $0xc0] sm:$0xff] }
 0x4e1   : > { %v1927_v8 = vmul.f32 %v1636_v41, %v1005_v2 }
 0x4e4   : > { %v1000_v59 = vpop.f32.mrf.mxu0 }
 0x4e5   : > { %v1001_v62 = vadd.f32 %v1000_v59, %v960_v52 }
 0x4e7   : > { %v1006_v3 = vadd.f32 %v1001_v62, %v1794_v24  ;;  %v1935_v24 = vmul.f32 %v1636_v41, %v1003_v7 }
 0x4e9   : > { %v1922_v6 = vmul.f32 %v1636_v41, %v1006_v3 }
 0x4eb   : > { %1072 = vmatpush.msrb.mxu2 %v1922_v6 }
 0x4ed   : > { %1073 = vmatpush.msrb.mxu2 %v1927_v8 }
 0x4ef   : > { %1074 = vmatpush.msrb.mxu2 %v1931_v9 }
 0x4f1   : > { %1075 = vmatpush.msrb.mxu2 %v1935_v24 }
 0x4f2   : > { %1459 = vmatmul.msk.f32.vlgmr.msrb.gmra.mxu2 %vm522_vm7, %v1447_v4 }
 0x4fa   : > { %1460 = vmatmul.msk.f32.gmra.mxu2 %vm522_vm7, %v1448_v36 }
 0x502   : > { %1461 = vmatmul.msk.f32.gmra.mxu2 %vm522_vm7, %v1449_v37 }
 0x50a   : > { %1462 = vmatmul.msk.f32.gmra.mxu2 %vm522_vm7, %v1450_v10 }
 0x512   : > { %1463 = vmatmul.msk.f32.gmra.mxu2 %vm522_vm7, %v1451_v11 }
 0x51a   : > { %1464 = vmatmul.msk.f32.gmra.mxu2 %vm522_vm7, %v1452_v12 }
 0x522   : > { %1465 = vmatmul.msk.f32.gmra.mxu2 %vm522_vm7, %v1453_v13 }
 0x52a   : > { %1466 = vmatmul.msk.f32.gmra.mxu2 %vm522_vm7, %v1454_v14 }
 0x532   : > { %1467 = vmatmul.msk.f32.gmra.mxu2 %vm522_vm7, %v1455_v15 }
 0x53a   : > { %1468 = vmatmul.msk.f32.gmra.mxu2 %vm522_vm7, %v1456_v16 }
 0x542   : > { %1469 = vmatmul.msk.f32.gmra.mxu2 %vm522_vm7, %v1457_v17 }
 0x54a   : > { %1470 = vmatmul.msk.f32.gmra.mxu2 %vm522_vm7, %v1458_v18  ;;  %v1475_v18 = vld [vmem:[%s2079_s6 + $0x40] sm:$0xff] }
 0x575   : > { %v1077_v19 = vpop.f32.mrf.mxu2 }
 0x576   : > { %1113 = vrot.lane.b32.xlu0 %v1077_v19, %s1539_s30  ;;  %v1477_v19 = vld [vmem:[%s2079_s6 + $0x50] sm:$0xff] }
 0x57d   : > { %v1080_v20 = vpop.f32.mrf.mxu2 }
 0x57e   : > { %1115 = vrot.lane.b32.xlu0 %v1080_v20, %s1539_s30  ;;  %v1478_v20 = vld [vmem:[%s2079_s6 + $0x58] sm:$0xff] }
 0x585   : > { %v1083_v21 = vpop.f32.mrf.mxu2 }
 0x586   : > { %1117 = vrot.lane.b32.xlu1 %v1083_v21, %s1539_s30 }
 0x58d   : > { %v1086_v22 = vpop.f32.mrf.mxu2 }
 0x58e   : > { %1119 = vrot.lane.b32.xlu0 %v1086_v22, %s1539_s30  ;;  %s373_s30 = scalar_lea.vmem %s2083_s10, %s1491_s15 }
 0x595   : > { %v1089_v23 = vpop.f32.mrf.mxu2 }
 0x59d   : > { %v1092_v25 = vpop.f32.mrf.mxu2 }
 0x5a5   : > { %v1095_v26 = vpop.f32.mrf.mxu2 }
 0x5ad   : > { %v1098_v27 = vpop.f32.mrf.mxu2 }
 0x5b5   : > { %v1101_v28 = vpop.f32.mrf.mxu2 }
 0x5b6   : > { %1121 = vrot.lane.b32.xlu0 %v1101_v28, %s1540_s11 }
 0x5bd   : > { %v1104_v30 = vpop.f32.mrf.mxu2 }
 0x5be   : > { %1211 = vperm.xlu0 %1516, %v1482_v29   ;;  %1123 = vrot.lane.b32.xlu1 %v1104_v30, %s1540_s11 }
 0x5c5   : > { %v1107_v32 = vpop.f32.mrf.mxu2 }
 0x5c6   : > { %1196 = vperm.xlu0 %1516, %v1479_v31   ;;  %1125 = vrot.lane.b32.xlu1 %v1107_v32, %s1540_s11 }
 0x5cd   : > { %v1110_v34 = vpop.f32.mrf.mxu2 }
 0x5ce   : > { %1163 = vperm.xlu1 %1517, %v1472_v33   ;;  %1127 = vrot.lane.b32.xlu2 %v1110_v34, %s1540_s11 }
 0x5d6   : > { %1206 = vperm.xlu1 %1517, %v1481_v35   ;;  %1168 = vperm.xlu2 %1518, %v1473_v61  }
 0x5de   : > { %1269 = vperm.xlu1 %1517, %v1265_v57   ;;  %1158 = vperm.xlu2 %1518, %v1471_v1  }
 0x5e6   : > { %1201 = vperm.xlu2 %1518, %v1480_v38  }
 0x5e8   : > { %v1114_v40 = vpop.permute.xlu0 %1113 }
 0x5e9   : > { %v1132_v63 = vsel %vm1129_vm12, %v1114_v40, 0.0 }
 0x5ea   : > { %v1136_v4 = vadd.f32 %v1132_v63, %v1089_v23 }
 0x5ee   : > { %1274 = vperm.xlu2 %1518, %v1266_v39  }
 0x5f0   : > { %v1116_v42 = vpop.permute.xlu0 %1115 }
 0x5f1   : > { %v1133_v0 = vsel %vm1129_vm12, %v1116_v42, 0.0 }
 0x5f2   : > { %v1137_v36 = vadd.f32 %v1133_v0, %v1092_v25 }
 0x5f8   : > { %v1118_v46 = vpop.permute.xlu1 %1117 }
 0x5f9   : > { %v1134_v56 = vsel %vm1129_vm12, %v1118_v46, 0.0 }
 0x5fa   : > { %v1138_v58 = vadd.f32 %v1134_v56, %v1095_v26 }
 0x600   : > { %v1120_v44 = vpop.permute.xlu0 %1119 }
 0x601   : > { %v1135_v45 = vsel %vm1129_vm12, %v1120_v44, 0.0 }
 0x602   : > { %v1139_v47 = vadd.f32 %v1135_v45, %v1098_v27 }
 0x628   : > { %v1128_v48 = vpop.permute.xlu2 %1127  ;;  %v1122_v60 = vpop.permute.xlu0 %1121 }
 0x629   : > { %v1146_v49 = vsel %vm1140_vm13, %v1128_v48, 0.0  ;;  %v1143_v3 = vsel %vm1140_vm13, %v1122_v60, 0.0 }
 0x62a   : > { %v1150_v50 = vadd.f32 %v1146_v49, %v1139_v47  ;;  %v1147_v11 = vadd.f32 %v1143_v3, %v1136_v4 }
 0x62c   : > { %v1179_v51 = vadd.f32 %v1174_v43, %v1150_v50 }
 0x62e   : > { %v1183_v52 = vmax.f32 %v1179_v51, 0.0 }
 0x630   : > { %v1124_v54 = vpop.permute.xlu1 %1123  ;;  %1238 = vmatpush.msra.mxu0 %v1183_v52  ;;  %v1169_v55 = vpop.permute.xlu2 %1168 }
 0x631   : > { %v1144_v5 = vsel %vm1140_vm13, %v1124_v54, 0.0  ;;  %v1212_v23 = vpop.permute.xlu0 %1211 }
 0x632   : > { %v1148_v12 = vadd.f32 %v1144_v5, %v1137_v36 }
 0x638   : > { %v1126_v59 = vpop.permute.xlu1 %1125  ;;  %v1159_v37 = vpop.permute.xlu2 %1158 }
 0x639   : > { %v1145_v62 = vsel %vm1140_vm13, %v1126_v59, 0.0  ;;  %v1176_v14 = vadd.f32 %v1159_v37, %v1147_v11  ;;  %v1197_v32 = vpop.permute.xlu0 %1196 }
 0x63a   : > { %v1149_v2 = vadd.f32 %v1145_v62, %v1138_v58 }
 0x63b   : > { %v1180_v17 = vmax.f32 %v1176_v14, 0.0 }
 0x63c   : > { %v1178_v7 = vadd.f32 %v1169_v55, %v1149_v2 }
 0x63e   : > { %v1182_v10 = vmax.f32 %v1178_v7, 0.0 }
 0x640   : > { %v1164_v13 = vpop.permute.xlu1 %1163  ;;  %1239 = vmatpush.msra.mxu0 %v1182_v10  ;;  %v1202_v28 = vpop.permute.xlu2 %1201 }
 0x641   : > { %v1177_v15 = vadd.f32 %v1164_v13, %v1148_v12 }
 0x643   : > { %v1181_v16 = vmax.f32 %v1177_v15, 0.0 }
 0x645   : > { %1240 = vmatpush.msra.mxu0 %v1181_v16 }
 0x647   : > { %1241 = vmatpush.msra.mxu0 %v1180_v17 }
 0x648   : > { %1483 = vmatmul.msk.f32.vlgmr.msra.gmra.mxu0 %vm522_vm7, %v1475_v18  ;;  %v1207_v26 = vpop.permute.xlu1 %1206  ;;  %v1275_v44 = vpop.permute.xlu2 %1274 }
 0x650   : > { %1484 = vmatmul.msk.f32.gmra.mxu0 %vm522_vm7, %v1476_v53 }
 0x658   : > { %1485 = vmatmul.msk.f32.gmra.mxu0 %vm522_vm7, %v1477_v19 }
 0x660   : > { %1486 = vmatmul.msk.f32.gmra.mxu0 %vm522_vm7, %v1478_v20 }
 0x6c5   : > { %v1243_v21 = vpop.f32.mrf.mxu0 }
 0x6c6   : > { %v1244_v33 = vadd.f32 %v1243_v21, %v1197_v32 }
 0x6c8   : > { %v1255_v1 = vadd.f32 %v1244_v33, %v1935_v24 }
 0x6ca   : > { %v1259_v40 = vmul.f32 %v1636_v41, %v1255_v1 }
 0x6cd   : > { %v1246_v22 = vpop.f32.mrf.mxu0 }
 0x6ce   : > { %v1247_v30 = vadd.f32 %v1246_v22, %v1202_v28 }
 0x6d0   : > { %v1256_v61 = vadd.f32 %v1247_v30, %v1931_v9  ;;  %v1270_v9 = vpop.permute.xlu1 %1269 }
 0x6d2   : > { %v1260_v39 = vmul.f32 %v1636_v41, %v1256_v61 }
 0x6d5   : > { %v1249_v25 = vpop.f32.mrf.mxu0 }
 0x6d6   : > { %v1250_v27 = vadd.f32 %v1249_v25, %v1207_v26 }
 0x6d8   : > { %v1257_v34 = vadd.f32 %v1250_v27, %v1927_v8  ;;  %v1264_v8 = vld [vmem:[%s2081_s8 + $0x8] sm:$0xff] }
 0x6da   : > { %v1261_v38 = vmul.f32 %v1636_v41, %v1257_v34 }
 0x6dd   : > { %v1252_v29 = vpop.f32.mrf.mxu0 }
 0x6de   : > { %v1253_v31 = vadd.f32 %v1252_v29, %v1212_v23 }
 0x6e0   : > { %v1258_v35 = vadd.f32 %v1253_v31, %v1922_v6  ;;  %v1263_v6 = vld [vmem:[%s2081_s8] sm:$0xff] }
 0x6e2   : > { %v1262_v57 = vmul.f32 %v1636_v41, %v1258_v35 }
 0x6e4   : > { %1295 = vmatpush.msrb.mxu0 %v1262_v57 }
 0x6e6   : > { %1296 = vmatpush.msrb.mxu0 %v1261_v38 }
 0x6e8   : > { %1297 = vmatpush.msrb.mxu0 %v1260_v39 }
 0x6ea   : > { %1298 = vmatpush.msrb.mxu0 %v1259_v40 }
 0x6eb   : > { %1487 = vmatmul.msk.f32.vlgmr.msrb.gmra.mxu0 %vm522_vm7, %v1263_v6 }
 0x6f3   : > { %1488 = vmatmul.msk.f32.gmra.mxu0 %vm522_vm7, %v1264_v8 }
 0x768   : > { %v1300_v24 = vpop.f32.mrf.mxu0 }
 0x769   : > { %v1301_v42 = vadd.f32 %v1300_v24, %v1270_v9 }
 0x76b   : > { %v1306_v43 = vmul.f32 %v1636_v41, %v1301_v42 }
 0x76d   : > { %1308 = vst [vmem:[%s373_s30] sm:$0xff] %v1306_v43 }
 0x770   : > { %v1303_v45 = vpop.f32.mrf.mxu0 }
 0x771   : > { %v1304_v46 = vadd.f32 %v1303_v45, %v1275_v44 }
 0x773   : > { %v1307_v47 = vmul.f32 %v1636_v41, %v1304_v46 }
 0x775   : > { %1309 = vst [vmem:[%s373_s30 + $0x8] sm:$0xff] %v1307_v47 }
 0x776 PF: > { %s20_s13 = sadd.s32 1, %s1532_s13  }
 0x777   : > { %p17_p4 = scmp.ge.s32.totalorder %s20_s13, 4  }
 0x779   :  { %19 = sbr.rel (!%p17_p4) target bundleno = 1 (0x1), region = 101 }

</bundles_post_ra>
